<compile_context>
chip_gen: v7x
topology: tpu7x:2x2x1
jax: 0.10.0
libtpu: 0.0.40
codegen_flags: <defaults>
</compile_context>

<pallas_src>
import functools

import jax
import jax.numpy as jnp
from jax import lax
from jax.experimental import pallas as pl
from jax.experimental.pallas import tpu as pltpu

INPUT_DIM = 3
HIDDEN = [128, 128, 128]
OUTPUT_DIM = 2
OUT_PAD = 8  # pad the output feature dim to a full sublane group


def pinn_kernel(x_ref,
                w1_ref, b1_ref,
                w2_ref, b2_ref,
                w3_ref, b3_ref,
                w4_ref, b4_ref,
                o_ref,
                *, chunk_n):
    """Whole MLP for one tile of columns (feature-major).

    x_ref : [INPUT_DIM, tile_n]            (batch on lanes)
    w1    : [128, 3] f32, b1: [128, 1] f32
    w2/w3 : [128, 128] in matmul dtype (pre-cast in wrapper)
    w4    : [OUT_PAD, 128] in matmul dtype (rows >= OUTPUT_DIM are zero)
    bK    : [out_features, 1] f32
    o_ref : [OUT_PAD, tile_n]
    """
    # Hoisted weight/bias loads: constant across lane sub-chunks.
    w1 = w1_ref[...]
    b1 = b1_ref[...]
    w2 = w2_ref[...]
    b2 = b2_ref[...]
    w3 = w3_ref[...]
    b3 = b3_ref[...]
    w4 = w4_ref[...]
    b4 = b4_ref[...]

    mx = w2.dtype  # MXU operand dtype (f32 or bf16), decided in the wrapper.
    n_chunks = x_ref.shape[1] // chunk_n

    @pl.loop(0, n_chunks)
    def _(c):
        start = pl.multiple_of(c * chunk_n, chunk_n)  # lane-aligned slice start
        x = x_ref[:, pl.ds(start, chunk_n)]           # [3, chunk_n] f32

        # Layer 1: K=3 contraction -> 3 broadcast multiply-adds on the VPU
        # ([128,1] * [1,chunk_n] broadcasts to [128, chunk_n]); skips the MXU.
        h = (w1[:, 0:1] * x[0:1, :]
             + w1[:, 1:2] * x[1:2, :]
             + w1[:, 2:3] * x[2:3, :]
             + b1)
        h = jnp.tanh(h)                               # [128, chunk_n] f32

        # Layer 2 (MXU): [128,128] @ [128, chunk_n], f32 accumulate.
        h = jnp.dot(w2, h.astype(mx),
                    preferred_element_type=jnp.float32) + b2
        h = jnp.tanh(h)

        # Layer 3 (MXU).
        h = jnp.dot(w3, h.astype(mx),
                    preferred_element_type=jnp.float32) + b3
        h = jnp.tanh(h)

        # Output layer: [8,128] @ [128, chunk_n] -> full-sublane, lane-dense store.
        out = jnp.dot(w4, h.astype(mx),
                      preferred_element_type=jnp.float32) + b4
        o_ref[:, pl.ds(start, chunk_n)] = out.astype(o_ref.dtype)


def pinn_forward(x, params, *, tile_n=2048, chunk_n=512,
                 matmul_dtype=jnp.float32):
    """x: [N, INPUT_DIM] float32.

    params: list of (W, b) in PyTorch nn.Linear layout: W [out, in], b [out].
    Returns [N, OUTPUT_DIM] float32.
    """
    N, D = x.shape
    assert D == INPUT_DIM

    chunk_n = min(chunk_n, tile_n)
    # Don't over-pad small batches; keep the DMA tile a multiple of the chunk.
    tile_n = min(tile_n, pl.cdiv(N, chunk_n) * chunk_n)
    assert tile_n % chunk_n == 0
    n_pad = pl.cdiv(N, tile_n) * tile_n

    # Feature-major: batch goes on the lane axis.  Pad lanes compute garbage
    # that is sliced off below (any future in-kernel reduction must mask them).
    x_t = x.T                                            # [3, N]
    if n_pad != N:
        x_t = jnp.pad(x_t, ((0, 0), (0, n_pad - N)))     # [3, n_pad]

    (w1, b1), (w2, b2), (w3, b3), (w4, b4) = params

    # Pre-cast MXU-fed weights once here (not per grid step in the kernel).
    w2m = w2.astype(matmul_dtype)
    w3m = w3.astype(matmul_dtype)
    # Zero-pad the output projection to OUT_PAD rows -> full-sublane store.
    w4p = jnp.zeros((OUT_PAD, HIDDEN[-1]), jnp.float32).at[:OUTPUT_DIM].set(w4)
    b4p = jnp.zeros((OUT_PAD,), jnp.float32).at[:OUTPUT_DIM].set(b4)
    w4m = w4p.astype(matmul_dtype)

    b1c = b1.reshape(-1, 1)
    b2c = b2.reshape(-1, 1)
    b3c = b3.reshape(-1, 1)
    b4c = b4p.reshape(-1, 1)

    def full(shape):
        # Whole array, same block for every grid step (weights / biases).
        return pl.BlockSpec(shape, lambda i: (0, 0))

    grid = (n_pad // tile_n,)

    # Advisory cost estimate so XLA schedules this kernel sensibly inside
    # larger graphs.
    flops_per_row = 2 * (INPUT_DIM * HIDDEN[0]
                         + HIDDEN[0] * HIDDEN[1]
                         + HIDDEN[1] * HIDDEN[2]
                         + HIDDEN[2] * OUTPUT_DIM)
    weight_bytes = sum(int(w.size + b.size) for w, b in params) * 4
    cost = pl.CostEstimate(
        flops=flops_per_row * n_pad,
        transcendentals=sum(HIDDEN) * n_pad,
        bytes_accessed=n_pad * (INPUT_DIM + OUT_PAD) * 4 + weight_bytes,
    )

    kernel = functools.partial(pinn_kernel, chunk_n=chunk_n)

    out_t = pl.pallas_call(
        kernel,
        out_shape=jax.ShapeDtypeStruct((OUT_PAD, n_pad), jnp.float32),
        grid_spec=pltpu.PrefetchScalarGridSpec(
            num_scalar_prefetch=0,
            grid=grid,
            in_specs=[
                pl.BlockSpec((INPUT_DIM, tile_n), lambda i: (0, i)),
                full(w1.shape), full(b1c.shape),
                full(w2m.shape), full(b2c.shape),
                full(w3m.shape), full(b3c.shape),
                full(w4m.shape), full(b4c.shape),
            ],
            out_specs=pl.BlockSpec((OUT_PAD, tile_n), lambda i: (0, i)),
        ),
        compiler_params=pltpu.CompilerParams(
            # On v7x the single "parallel" axis lets the runtime shard grid
            # steps across both TensorCores; no-op on v5e/v6e.
            dimension_semantics=("parallel",),
            vmem_limit_bytes=32 * 1024 * 1024,
        ),
        cost_estimate=cost,
    )(x_t, w1, b1c, w2m, b2c, w3m, b3c, w4m, b4c)

    # Layout plumbing back to [N, OUTPUT_DIM].
    return out_t[:OUTPUT_DIM, :N].T


def init_params(key):
    """Deterministic init mimicking nn.Linear default (uniform +-1/sqrt(fan_in)).

    Returned in PyTorch layout: W [out_features, in_features], b [out_features].
    """
    dims = [INPUT_DIM] + HIDDEN + [OUTPUT_DIM]
    params = []
    for fan_in, fan_out in zip(dims[:-1], dims[1:]):
        key, kw, kb = jax.random.split(key, 3)
        bound = 1.0 / jnp.sqrt(fan_in)
        w = jax.random.uniform(kw, (fan_out, fan_in), jnp.float32, -bound, bound)
        b = jax.random.uniform(kb, (fan_out,), jnp.float32, -bound, bound)
        params.append((w, b))
    return params


def pinn_forward_ref(x, params):
    """Pure-JAX reference (PyTorch-layout weights), true-f32 matmuls."""
    h = x
    for w, b in params[:-1]:
        h = jnp.tanh(jnp.dot(h, w.T, precision=lax.Precision.HIGHEST) + b)
    w, b = params[-1]
    return jnp.dot(h, w.T, precision=lax.Precision.HIGHEST) + b


if __name__ == "__main__":
    key = jax.random.PRNGKey(0)
    key, kx = jax.random.split(key)

    # Non-multiple-of-tile batch of collocation points (t, x, y) so padding,
    # a multi-step grid (2500 -> 4096 = 2 x 2048) and the inner 512-lane
    # sub-chunk loop (4 chunks per tile) are all exercised.
    N = 2500
    x = jax.random.normal(kx, (N, INPUT_DIM), jnp.float32)
    params = init_params(key)

    ref = pinn_forward_ref(x, params)

    # f32 path (default; safe for PINN second-derivative precision).
    out = jax.block_until_ready(pinn_forward(x, params))
    assert out.shape == (N, OUTPUT_DIM)
    assert jnp.allclose(out, ref, atol=1e-5, rtol=1e-5), "f32 mismatch vs reference"

    # bf16 MXU-operand path (f32 accumulation + f32 tanh); valid on v5e/v6e/v7x.
    out_bf16 = jax.block_until_ready(
        pinn_forward(x, params, matmul_dtype=jnp.bfloat16))
    assert jnp.allclose(out_bf16, ref, atol=5e-2, rtol=5e-2), "bf16 mismatch vs reference"

    print("KERNEL_OK")
</pallas_src>

<mosaic_0001>
module attributes {stable_mosaic.version = 11 : i64} {
  func.func @pinn_kernel(%arg0: i32, %arg1: memref<3x2048xf32, #tpu.memory_space<vmem>>, %arg2: memref<128x3xf32, #tpu.memory_space<vmem>>, %arg3: memref<128x1xf32, #tpu.memory_space<vmem>>, %arg4: memref<128x128xf32, #tpu.memory_space<vmem>>, %arg5: memref<128x1xf32, #tpu.memory_space<vmem>>, %arg6: memref<128x128xf32, #tpu.memory_space<vmem>>, %arg7: memref<128x1xf32, #tpu.memory_space<vmem>>, %arg8: memref<8x128xf32, #tpu.memory_space<vmem>>, %arg9: memref<8x1xf32, #tpu.memory_space<vmem>>, %arg10: memref<8x2048xf32, #tpu.memory_space<vmem>>) attributes {dimension_semantics = [#tpu.dimension_semantics<parallel>], iteration_bounds = array<i64: 2>, scalar_prefetch = 0 : i64, scratch_operands = 0 : i64, tpu.core_type = #tpu.core_type<tc>, window_params = [{transform_indices = @transform_0, window_bounds = array<i64: 3, 2048>}, {pipeline_mode = #tpu.pipeline_mode<synchronous>, transform_indices = @transform_1, window_bounds = array<i64: 128, 3>}, {pipeline_mode = #tpu.pipeline_mode<synchronous>, transform_indices = @transform_2, window_bounds = array<i64: 128, 1>}, {pipeline_mode = #tpu.pipeline_mode<synchronous>, transform_indices = @transform_3, window_bounds = array<i64: 128, 128>}, {pipeline_mode = #tpu.pipeline_mode<synchronous>, transform_indices = @transform_4, window_bounds = array<i64: 128, 1>}, {pipeline_mode = #tpu.pipeline_mode<synchronous>, transform_indices = @transform_5, window_bounds = array<i64: 128, 128>}, {pipeline_mode = #tpu.pipeline_mode<synchronous>, transform_indices = @transform_6, window_bounds = array<i64: 128, 1>}, {pipeline_mode = #tpu.pipeline_mode<synchronous>, transform_indices = @transform_7, window_bounds = array<i64: 8, 128>}, {pipeline_mode = #tpu.pipeline_mode<synchronous>, transform_indices = @transform_8, window_bounds = array<i64: 8, 1>}, {transform_indices = @transform_9, window_bounds = array<i64: 8, 2048>}]} {
    %c0 = arith.constant 0 : index
    %c0_0 = arith.constant 0 : index
    %0 = vector.load %arg2[%c0, %c0_0] : memref<128x3xf32, #tpu.memory_space<vmem>>, vector<128x3xf32>
    %c0_1 = arith.constant 0 : index
    %c0_2 = arith.constant 0 : index
    %1 = vector.load %arg3[%c0_1, %c0_2] : memref<128x1xf32, #tpu.memory_space<vmem>>, vector<128x1xf32>
    %c0_3 = arith.constant 0 : index
    %c0_4 = arith.constant 0 : index
    %2 = vector.load %arg4[%c0_3, %c0_4] : memref<128x128xf32, #tpu.memory_space<vmem>>, vector<128x128xf32>
    %c0_5 = arith.constant 0 : index
    %c0_6 = arith.constant 0 : index
    %3 = vector.load %arg5[%c0_5, %c0_6] : memref<128x1xf32, #tpu.memory_space<vmem>>, vector<128x1xf32>
    %c0_7 = arith.constant 0 : index
    %c0_8 = arith.constant 0 : index
    %4 = vector.load %arg6[%c0_7, %c0_8] : memref<128x128xf32, #tpu.memory_space<vmem>>, vector<128x128xf32>
    %c0_9 = arith.constant 0 : index
    %c0_10 = arith.constant 0 : index
    %5 = vector.load %arg7[%c0_9, %c0_10] : memref<128x1xf32, #tpu.memory_space<vmem>>, vector<128x1xf32>
    %c0_11 = arith.constant 0 : index
    %c0_12 = arith.constant 0 : index
    %6 = vector.load %arg8[%c0_11, %c0_12] : memref<8x128xf32, #tpu.memory_space<vmem>>, vector<8x128xf32>
    %c0_13 = arith.constant 0 : index
    %c0_14 = arith.constant 0 : index
    %7 = vector.load %arg9[%c0_13, %c0_14] : memref<8x1xf32, #tpu.memory_space<vmem>>, vector<8x1xf32>
    %c0_i32 = arith.constant 0 : i32
    %c4_i32 = arith.constant 4 : i32
    %8 = arith.addi %c0_i32, %c4_i32 : i32
    %c1_i32 = arith.constant 1 : i32
    scf.for %arg11 = %c0_i32 to %8 step %c1_i32  : i32 {
      %c1_i32_16 = arith.constant 1 : i32
      %9 = arith.muli %arg11, %c1_i32_16 : i32
      %c0_i32_17 = arith.constant 0 : i32
      %10 = arith.addi %c0_i32_17, %9 : i32
      %c512_i32 = arith.constant 512 : i32
      %11 = arith.muli %10, %c512_i32 : i32
      %12 = tpu.assume_multiple %11, 512 : i32
      %c0_18 = arith.constant 0 : index
      %13 = arith.index_cast %12 : i32 to index
      %14 = vector.load %arg1[%c0_18, %13] : memref<3x2048xf32, #tpu.memory_space<vmem>>, vector<3x512xf32>
      %15 = vector.extract_strided_slice %0 {offsets = [0, 0], sizes = [128, 1], strides = [1, 1]} : vector<128x3xf32> to vector<128x1xf32>
      %16 = vector.extract_strided_slice %14 {offsets = [0, 0], sizes = [1, 512], strides = [1, 1]} : vector<3x512xf32> to vector<1x512xf32>
      %17 = vector.broadcast %15 : vector<128x1xf32> to vector<128x512xf32>
      %18 = vector.broadcast %16 : vector<1x512xf32> to vector<128x512xf32>
      %19 = arith.mulf %17, %18 : vector<128x512xf32>
      %20 = vector.extract_strided_slice %0 {offsets = [0, 1], sizes = [128, 1], strides = [1, 1]} : vector<128x3xf32> to vector<128x1xf32>
      %21 = vector.extract_strided_slice %14 {offsets = [1, 0], sizes = [1, 512], strides = [1, 1]} : vector<3x512xf32> to vector<1x512xf32>
      %22 = vector.broadcast %20 : vector<128x1xf32> to vector<128x512xf32>
      %23 = vector.broadcast %21 : vector<1x512xf32> to vector<128x512xf32>
      %24 = arith.mulf %22, %23 : vector<128x512xf32>
      %25 = arith.addf %19, %24 : vector<128x512xf32>
      %26 = vector.extract_strided_slice %0 {offsets = [0, 2], sizes = [128, 1], strides = [1, 1]} : vector<128x3xf32> to vector<128x1xf32>
      %27 = vector.extract_strided_slice %14 {offsets = [2, 0], sizes = [1, 512], strides = [1, 1]} : vector<3x512xf32> to vector<1x512xf32>
      %28 = vector.broadcast %26 : vector<128x1xf32> to vector<128x512xf32>
      %29 = vector.broadcast %27 : vector<1x512xf32> to vector<128x512xf32>
      %30 = arith.mulf %28, %29 : vector<128x512xf32>
      %31 = arith.addf %25, %30 : vector<128x512xf32>
      %32 = vector.broadcast %1 : vector<128x1xf32> to vector<128x512xf32>
      %33 = arith.addf %31, %32 : vector<128x512xf32>
      %34 = math.tanh %33 : vector<128x512xf32>
      %cst = arith.constant dense<0.000000e+00> : vector<128x512xf32>
      %35 = tpu.matmul %2, %34, %cst {dimension_numbers = #tpu.dot_dimension_numbers<[1], [0], [0], [1], [0, 0, 1, 1], [], []>} : vector<128x128xf32>, vector<128x512xf32>, vector<128x512xf32> -> vector<128x512xf32>
      %36 = vector.broadcast %3 : vector<128x1xf32> to vector<128x512xf32>
      %37 = arith.addf %35, %36 : vector<128x512xf32>
      %38 = math.tanh %37 : vector<128x512xf32>
      %cst_19 = arith.constant dense<0.000000e+00> : vector<128x512xf32>
      %39 = tpu.matmul %4, %38, %cst_19 {dimension_numbers = #tpu.dot_dimension_numbers<[1], [0], [0], [1], [0, 0, 1, 1], [], []>} : vector<128x128xf32>, vector<128x512xf32>, vector<128x512xf32> -> vector<128x512xf32>
      %40 = vector.broadcast %5 : vector<128x1xf32> to vector<128x512xf32>
      %41 = arith.addf %39, %40 : vector<128x512xf32>
      %42 = math.tanh %41 : vector<128x512xf32>
      %cst_20 = arith.constant dense<0.000000e+00> : vector<8x512xf32>
      %43 = tpu.matmul %6, %42, %cst_20 {dimension_numbers = #tpu.dot_dimension_numbers<[1], [0], [0], [1], [0, 0, 1, 1], [], []>} : vector<8x128xf32>, vector<128x512xf32>, vector<8x512xf32> -> vector<8x512xf32>
      %44 = vector.broadcast %7 : vector<8x1xf32> to vector<8x512xf32>
      %45 = arith.addf %43, %44 : vector<8x512xf32>
      %c0_21 = arith.constant 0 : index
      %46 = arith.index_cast %12 : i32 to index
      %47 = vector.load %arg10[%c0_21, %46] : memref<8x2048xf32, #tpu.memory_space<vmem>>, vector<8x512xf32>
      tpu.vector_store %arg10[%c0_21, %46], %45 {strides = array<i32>} : memref<8x2048xf32, #tpu.memory_space<vmem>>, vector<8x512xf32>,
    }
    %c4_i32_15 = arith.constant 4 : i32
    return
  }
  func.func @transform_0(%arg0: i32) -> (i32, i32) {
    %c0_i32 = arith.constant 0 : i32
    %c0_i32_0 = arith.constant 0 : i32
    return %c0_i32, %arg0 : i32, i32
  }
  func.func @transform_1(%arg0: i32) -> (i32, i32) {
    %c0_i32 = arith.constant 0 : i32
    %c0_i32_0 = arith.constant 0 : i32
    %c0_i32_1 = arith.constant 0 : i32
    return %c0_i32, %c0_i32_0 : i32, i32
  }
  func.func @transform_2(%arg0: i32) -> (i32, i32) {
    %c0_i32 = arith.constant 0 : i32
    %c0_i32_0 = arith.constant 0 : i32
    %c0_i32_1 = arith.constant 0 : i32
    return %c0_i32, %c0_i32_0 : i32, i32
  }
  func.func @transform_3(%arg0: i32) -> (i32, i32) {
    %c0_i32 = arith.constant 0 : i32
    %c0_i32_0 = arith.constant 0 : i32
    %c0_i32_1 = arith.constant 0 : i32
    return %c0_i32, %c0_i32_0 : i32, i32
  }
  func.func @transform_4(%arg0: i32) -> (i32, i32) {
    %c0_i32 = arith.constant 0 : i32
    %c0_i32_0 = arith.constant 0 : i32
    %c0_i32_1 = arith.constant 0 : i32
    return %c0_i32, %c0_i32_0 : i32, i32
  }
  func.func @transform_5(%arg0: i32) -> (i32, i32) {
    %c0_i32 = arith.constant 0 : i32
    %c0_i32_0 = arith.constant 0 : i32
    %c0_i32_1 = arith.constant 0 : i32
    return %c0_i32, %c0_i32_0 : i32, i32
  }
  func.func @transform_6(%arg0: i32) -> (i32, i32) {
    %c0_i32 = arith.constant 0 : i32
    %c0_i32_0 = arith.constant 0 : i32
    %c0_i32_1 = arith.constant 0 : i32
    return %c0_i32, %c0_i32_0 : i32, i32
  }
  func.func @transform_7(%arg0: i32) -> (i32, i32) {
    %c0_i32 = arith.constant 0 : i32
    %c0_i32_0 = arith.constant 0 : i32
    %c0_i32_1 = arith.constant 0 : i32
    return %c0_i32, %c0_i32_0 : i32, i32
  }
  func.func @transform_8(%arg0: i32) -> (i32, i32) {
    %c0_i32 = arith.constant 0 : i32
    %c0_i32_0 = arith.constant 0 : i32
    %c0_i32_1 = arith.constant 0 : i32
    return %c0_i32, %c0_i32_0 : i32, i32
  }
  func.func @transform_9(%arg0: i32) -> (i32, i32) {
    %c0_i32 = arith.constant 0 : i32
    %c0_i32_0 = arith.constant 0 : i32
    return %c0_i32, %arg0 : i32, i32
  }
}

</mosaic_0001>

<bundles_post_ra>
// kernel: tpu_custom_call.1
= control target key start
LH: loop header
LB: loop body
LE: loop exit
PB: predicated region body
PF: predicated region fallthrough
CT: control target
= control target key end

     0   :  { %14 = vsyncpa [#allocation3], 0  ;;  %s4656_s0 = inlined_call_operand.vmem [shape: f32[3,4096], index: 0, kind: input, shape index: {}]   ;;  %s4657_s1 = inlined_call_operand.vmem [shape: f32[128,3], index: 1, kind: input, shape index: {}]   ;;  %s4658_s2 = inlined_call_operand.vmem [shape: f32[128,1], index: 2, kind: input, shape index: {}]   ;;  %s4659_s3 = inlined_call_operand.vmem [shape: f32[128,128], index: 3, kind: input, shape index: {}]   ;;  %s4660_s4 = inlined_call_operand.vmem [shape: f32[128,1], index: 4, kind: input, shape index: {}]   ;;  %s4661_s5 = inlined_call_operand.vmem [shape: f32[128,128], index: 5, kind: input, shape index: {}]   ;;  %s4662_s6 = inlined_call_operand.vmem [shape: f32[128,1], index: 6, kind: input, shape index: {}]   ;;  %s4663_s7 = inlined_call_operand.vmem [shape: f32[8,128], index: 7, kind: input, shape index: {}]   ;;  %s4664_s8 = inlined_call_operand.vmem [shape: f32[8,1], index: 8, kind: input, shape index: {}]   ;;  %s4665_s9 = inlined_call_operand.hbm [shape: f32[8,4096], index: 9, kind: output, shape index: {}]  }
   0x1   :  { %16 = vsyncpa [#allocation3 + $0x1], 0  ;;  %s3256_s30 = smov 0   ;;  %s3258_s10 = smov 0  }
   0x2   :  { %s3260_s11 = smov 0   ;;  %s3262_s12 = smov 0  }
   0x3 LB: > { %s3277_s13 = sadd.s32 4294967295, %s3195_s12   ;;  %s2459_s14 = sadd.s32 4294967294, %s3195_s12   ;;  %s3195_s12 = sphi %s3262_s12, %s4954_s12   ;;  %s3191_s11 = sphi %s3260_s11, %s4953_s11   ;;  %s3187_s10 = sphi %s3258_s10, %s4952_s10   ;;  %s3183_s30 = sphi %s3256_s30, %s4951_s30  }
   0x4   : > { %s3281_s15 = sadd.s32 1, %s3195_s12   ;;  %s223_s16 = sadd.s32 1, %s3191_s11 }
   0x5   : > { %s220_s17 = ssub.s32 %s3195_s12, %s3281_s15  ;;  %p233_p0 = scmp.ne.s32.totalorder %s3191_s11, %s3187_s10 }
   0x6   : > { %p221_p1 = scmp.eq.s32.totalorder %s220_s17, 0  ;;  %p234_p2 = scmp.eq.s32.totalorder %s3277_s13, 1 }
   0x7   : > { %p239_p3 = scmp.ne.s32.totalorder %s3187_s10, %s3183_s30  ;;  %p240_p4 = scmp.eq.s32.totalorder %s2459_s14, 1 }
   0x8   : > { %s3292_s18 = scalar_select %p221_p1, %s3191_s11, %s223_s16  }
   0x9   : > { %p3294_p5 = por %p234_p2, %p233_p0  ;;  %p3298_p6 = por %p240_p4, %p239_p3 }
   0xa   : > { %4731 = sst [smem:[#allocation5_spill]] %s3292_s18  ;;  %p2462_p7 = scmp.ge.s32.totalorder %s3195_s12, 1 }
   0xb   : > { %p291_p8 = scmp.lt.s32.totalorder %s3195_s12, 3 }
   0xd   : > { %p292_p9 = pnand %p2462_p7, %p291_p8 }
   0xf   : > { %295 = sbr.rel (%p292_p9) target bundleno = 1239 (0x4d7), region = 56 }
  0x16   : > { %s4666_s21 = sand.u32 1, %s3187_s10   ;;  %s2464_s22 = sshll.u32 %s3277_s13, 4  ;;  %v3309_v0 = vld [vmem:[%s4657_s1] sm:$0xff]  ;;  %v3314_v1 = vld [vmem:[%s4657_s1 + $0x8] sm:$0xff]  ;;  %v3319_v2 = vld [vmem:[%s4657_s1 + $0x10] sm:$0xff] }
  0x17   : > { %4734 = vst [vmem:[#allocation6_spill] sm:$0xff] %v3309_v0  ;;  %4735 = vst [vmem:[#allocation7_spill] sm:$0xff] %v3314_v1  ;;  %s3323_s29 = sshll.u32 %s4666_s21, 7  ;;  %p328_p10 = scmp.lt.s32.totalorder %s2464_s22, 31  ;;  %v3328_v3 = vld [vmem:[%s4657_s1 + $0x18] sm:$0xff]  ;;  %v3333_v4 = vld [vmem:[%s4657_s1 + $0x20] sm:$0xff] }
  0x18   : > { %4736 = vst [vmem:[#allocation8_spill] sm:$0xff] %v3319_v2  ;;  %4737 = vst [vmem:[#allocation9_spill] sm:$0xff] %v3328_v3  ;;  %v3338_v5 = vld [vmem:[%s4657_s1 + $0x28] sm:$0xff]  ;;  %v3343_v6 = vld [vmem:[%s4657_s1 + $0x30] sm:$0xff]  ;;  %s326_s28 = scalar_lea.vmem [#allocation2], %s3323_s29  ;;  %s3806_s14 = smov 0  }
  0x19   : > { %4738 = vst [vmem:[#allocation10_spill] sm:$0xff] %v3333_v4  ;;  %4739 = vst [vmem:[#allocation11_spill] sm:$0xff] %v3338_v5  ;;  %v3348_v7 = vld [vmem:[%s4657_s1 + $0x38] sm:$0xff]  ;;  %v3353_v8 = vld [vmem:[%s4657_s1 + $0x40] sm:$0xff]  ;;  %s4956_s22 = smov (!%p328_p10, %s2464_s22), 31 }
  0x1a   : > { %4740 = vst [vmem:[#allocation12_spill] sm:$0xff] %v3343_v6  ;;  %4741 = vst [vmem:[#allocation13_spill] sm:$0xff] %v3348_v7  ;;  %v3358_v9 = vld [vmem:[%s4657_s1 + $0x48] sm:$0xff]  ;;  %v3363_v10 = vld [vmem:[%s4657_s1 + $0x50] sm:$0xff]  ;;  %s2465_s24 = sshll.u32 %s4956_s22, 2 }
  0x1b   : > { %4742 = vst [vmem:[#allocation14_spill] sm:$0xff] %v3353_v8  ;;  %4743 = vst [vmem:[#allocation15_spill] sm:$0xff] %v3358_v9  ;;  %v3368_v11 = vld [vmem:[%s4657_s1 + $0x58] sm:$0xff]  ;;  %v3373_v12 = vld [vmem:[%s4657_s1 + $0x60] sm:$0xff]  ;;  %s3403_s23 = scalar_lea.vmem %s4656_s0, %s2465_s24 }
  0x1c   : > { %4744 = vst [vmem:[#allocation16_spill] sm:$0xff] %v3363_v10  ;;  %4745 = vst [vmem:[#allocation17_spill] sm:$0xff] %v3368_v11  ;;  %v3378_v13 = vld [vmem:[%s4657_s1 + $0x68] sm:$0xff]  ;;  %v3383_v14 = vld [vmem:[%s4657_s1 + $0x70] sm:$0xff] }
  0x1d   : > { %4746 = vst [vmem:[#allocation18_spill] sm:$0xff] %v3373_v12  ;;  %4747 = vst [vmem:[#allocation19_spill] sm:$0xff] %v3378_v13  ;;  %v3388_v15 = vld [vmem:[%s4657_s1 + $0x78] sm:$0xff]  ;;  %v3393_v16 = vld [vmem:[%s4658_s2] sm:$0xff] }
  0x1e   : > { %4748 = vst [vmem:[#allocation20_spill] sm:$0xff] %v3383_v14  ;;  %4749 = vst [vmem:[#allocation21_spill] sm:$0xff] %v3388_v15  ;;  %v3398_v17 = vld [vmem:[%s4658_s2 + $0x8] sm:$0xff]  ;;  %v3408_v18 = vld [vmem:[%s4658_s2 + $0x10] sm:$0xff] }
  0x1f   : > { %4750 = vst [vmem:[#allocation22_spill] sm:$0xff] %v3393_v16  ;;  %4751 = vst [vmem:[#allocation23_spill] sm:$0xff] %v3398_v17  ;;  %v3413_v19 = vld [vmem:[%s4658_s2 + $0x18] sm:$0xff]  ;;  %v3418_v20 = vld [vmem:[%s4658_s2 + $0x20] sm:$0xff] }
  0x20   : > { %4752 = vst [vmem:[#allocation24_spill] sm:$0xff] %v3408_v18  ;;  %4753 = vst [vmem:[#allocation25_spill] sm:$0xff] %v3413_v19  ;;  %v3423_v21 = vld [vmem:[%s4658_s2 + $0x28] sm:$0xff]  ;;  %v3428_v22 = vld [vmem:[%s4658_s2 + $0x30] sm:$0xff] }
  0x21   : > { %4754 = vst [vmem:[#allocation26_spill] sm:$0xff] %v3418_v20  ;;  %4755 = vst [vmem:[#allocation27_spill] sm:$0xff] %v3423_v21  ;;  %v3433_v23 = vld [vmem:[%s4658_s2 + $0x38] sm:$0xff]  ;;  %v3438_v24 = vld [vmem:[%s4658_s2 + $0x40] sm:$0xff] }
  0x22   : > { %4756 = vst [vmem:[#allocation28_spill] sm:$0xff] %v3428_v22  ;;  %4757 = vst [vmem:[#allocation29_spill] sm:$0xff] %v3433_v23  ;;  %v3443_v25 = vld [vmem:[%s4658_s2 + $0x48] sm:$0xff]  ;;  %v3448_v26 = vld [vmem:[%s4658_s2 + $0x50] sm:$0xff] }
  0x23   : > { %4758 = vst [vmem:[#allocation30_spill] sm:$0xff] %v3438_v24  ;;  %4759 = vst [vmem:[#allocation31_spill] sm:$0xff] %v3443_v25  ;;  %v3453_v27 = vld [vmem:[%s4658_s2 + $0x58] sm:$0xff]  ;;  %v3458_v28 = vld [vmem:[%s4658_s2 + $0x60] sm:$0xff] }
  0x24   : > { %4760 = vst [vmem:[#allocation32_spill] sm:$0xff] %v3448_v26  ;;  %4761 = vst [vmem:[#allocation33_spill] sm:$0xff] %v3453_v27  ;;  %v3463_v29 = vld [vmem:[%s4658_s2 + $0x68] sm:$0xff]  ;;  %v3468_v30 = vld [vmem:[%s4658_s2 + $0x70] sm:$0xff] }
  0x25   : > { %4762 = vst [vmem:[#allocation34_spill] sm:$0xff] %v3458_v28  ;;  %4763 = vst [vmem:[#allocation35_spill] sm:$0xff] %v3463_v29  ;;  %v3473_v31 = vld [vmem:[%s4658_s2 + $0x78] sm:$0xff]  ;;  %v3478_v32 = vld [vmem:[%s4659_s3] sm:$0xff] }
  0x26   : > { %4764 = vst [vmem:[#allocation36_spill] sm:$0xff] %v3468_v30  ;;  %4765 = vst [vmem:[#allocation37_spill] sm:$0xff] %v3473_v31  ;;  %v3483_v33 = vld [vmem:[%s4659_s3 + $0x8] sm:$0xff]  ;;  %v3488_v34 = vld [vmem:[%s4659_s3 + $0x10] sm:$0xff] }
  0x27   : > { %4766 = vst [vmem:[#allocation38_spill] sm:$0xff] %v3478_v32  ;;  %4767 = vst [vmem:[#allocation39_spill] sm:$0xff] %v3483_v33  ;;  %v3493_v35 = vld [vmem:[%s4659_s3 + $0x18] sm:$0xff]  ;;  %v3498_v36 = vld [vmem:[%s4659_s3 + $0x20] sm:$0xff] }
  0x28   : > { %4768 = vst [vmem:[#allocation40_spill] sm:$0xff] %v3488_v34  ;;  %4769 = vst [vmem:[#allocation41_spill] sm:$0xff] %v3493_v35  ;;  %v3503_v37 = vld [vmem:[%s4659_s3 + $0x28] sm:$0xff]  ;;  %v3508_v38 = vld [vmem:[%s4659_s3 + $0x30] sm:$0xff] }
  0x29   : > { %4770 = vst [vmem:[#allocation42_spill] sm:$0xff] %v3498_v36  ;;  %4771 = vst [vmem:[#allocation43_spill] sm:$0xff] %v3503_v37  ;;  %v3513_v39 = vld [vmem:[%s4659_s3 + $0x38] sm:$0xff]  ;;  %v3518_v40 = vld [vmem:[%s4659_s3 + $0x40] sm:$0xff] }
  0x2a   : > { %4772 = vst [vmem:[#allocation44_spill] sm:$0xff] %v3508_v38  ;;  %4773 = vst [vmem:[#allocation45_spill] sm:$0xff] %v3513_v39  ;;  %v3523_v41 = vld [vmem:[%s4659_s3 + $0x48] sm:$0xff]  ;;  %v3528_v42 = vld [vmem:[%s4659_s3 + $0x50] sm:$0xff] }
  0x2b   : > { %4774 = vst [vmem:[#allocation46_spill] sm:$0xff] %v3518_v40  ;;  %4775 = vst [vmem:[#allocation47_spill] sm:$0xff] %v3523_v41  ;;  %v3533_v43 = vld [vmem:[%s4659_s3 + $0x58] sm:$0xff]  ;;  %v3538_v44 = vld [vmem:[%s4659_s3 + $0x60] sm:$0xff] }
  0x2c   : > { %4776 = vst [vmem:[#allocation48_spill] sm:$0xff] %v3528_v42  ;;  %4777 = vst [vmem:[#allocation49_spill] sm:$0xff] %v3533_v43  ;;  %v3543_v45 = vld [vmem:[%s4659_s3 + $0x68] sm:$0xff]  ;;  %v3548_v46 = vld [vmem:[%s4659_s3 + $0x70] sm:$0xff] }
  0x2d   : > { %4778 = vst [vmem:[#allocation50_spill] sm:$0xff] %v3538_v44  ;;  %4779 = vst [vmem:[#allocation51_spill] sm:$0xff] %v3543_v45  ;;  %v3553_v47 = vld [vmem:[%s4659_s3 + $0x78] sm:$0xff]  ;;  %v3558_v48 = vld [vmem:[%s4660_s4] sm:$0xff] }
  0x2e   : > { %4780 = vst [vmem:[#allocation52_spill] sm:$0xff] %v3548_v46  ;;  %4781 = vst [vmem:[#allocation53_spill] sm:$0xff] %v3553_v47  ;;  %v3563_v49 = vld [vmem:[%s4660_s4 + $0x8] sm:$0xff]  ;;  %v3568_v50 = vld [vmem:[%s4660_s4 + $0x10] sm:$0xff] }
  0x2f   : > { %4782 = vst [vmem:[#allocation54_spill] sm:$0xff] %v3563_v49  ;;  %v3573_v51 = vld [vmem:[%s4660_s4 + $0x18] sm:$0xff]  ;;  %v3578_v52 = vld [vmem:[%s4660_s4 + $0x20] sm:$0xff]  ;;  %v3583_v53 = vld [vmem:[%s4660_s4 + $0x28] sm:$0xff] }
  0x30   : > { %4783 = vst [vmem:[#allocation55_spill] sm:$0xff] %v3573_v51  ;;  %4784 = vst [vmem:[#allocation56_spill] sm:$0xff] %v3583_v53  ;;  %v3588_v54 = vld [vmem:[%s4660_s4 + $0x30] sm:$0xff]  ;;  %v3593_v55 = vld [vmem:[%s4660_s4 + $0x38] sm:$0xff] }
  0x31   : > { %4785 = vst [vmem:[#allocation57_spill] sm:$0xff] %v3588_v54  ;;  %4786 = vst [vmem:[#allocation58_spill] sm:$0xff] %v3593_v55  ;;  %v3598_v56 = vld [vmem:[%s4660_s4 + $0x40] sm:$0xff]  ;;  %v3603_v57 = vld [vmem:[%s4660_s4 + $0x48] sm:$0xff] }
  0x32   : > { %4787 = vst [vmem:[#allocation59_spill] sm:$0xff] %v3598_v56  ;;  %4788 = vst [vmem:[#allocation60_spill] sm:$0xff] %v3603_v57  ;;  %v3608_v58 = vld [vmem:[%s4660_s4 + $0x50] sm:$0xff]  ;;  %v3613_v59 = vld [vmem:[%s4660_s4 + $0x58] sm:$0xff] }
  0x33   : > { %4789 = vst [vmem:[#allocation61_spill] sm:$0xff] %v3608_v58  ;;  %4790 = vst [vmem:[#allocation62_spill] sm:$0xff] %v3613_v59  ;;  %v3618_v60 = vld [vmem:[%s4660_s4 + $0x60] sm:$0xff]  ;;  %v3623_v61 = vld [vmem:[%s4660_s4 + $0x68] sm:$0xff] }
  0x34   : > { %4791 = vst [vmem:[#allocation63_spill] sm:$0xff] %v3618_v60  ;;  %4792 = vst [vmem:[#allocation64_spill] sm:$0xff] %v3623_v61  ;;  %v3628_v62 = vld [vmem:[%s4660_s4 + $0x70] sm:$0xff]  ;;  %v3633_v63 = vld [vmem:[%s4660_s4 + $0x78] sm:$0xff] }
  0x35   : > { %4793 = vst [vmem:[#allocation65_spill] sm:$0xff] %v3628_v62  ;;  %4794 = vst [vmem:[#allocation66_spill] sm:$0xff] %v3633_v63  ;;  %v3638_v47 = vld [vmem:[%s4661_s5] sm:$0xff]  ;;  %v3643_v46 = vld [vmem:[%s4661_s5 + $0x8] sm:$0xff] }
  0x36   : > { %4795 = vst [vmem:[#allocation67_spill] sm:$0xff] %v3638_v47  ;;  %4796 = vst [vmem:[#allocation68_spill] sm:$0xff] %v3643_v46  ;;  %v3648_v45 = vld [vmem:[%s4661_s5 + $0x10] sm:$0xff]  ;;  %v3653_v44 = vld [vmem:[%s4661_s5 + $0x18] sm:$0xff] }
  0x37   : > { %4797 = vst [vmem:[#allocation69_spill] sm:$0xff] %v3648_v45  ;;  %4798 = vst [vmem:[#allocation70_spill] sm:$0xff] %v3653_v44  ;;  %v3658_v43 = vld [vmem:[%s4661_s5 + $0x20] sm:$0xff]  ;;  %v3663_v47 = vld [vmem:[%s4661_s5 + $0x28] sm:$0xff] }
  0x38   : > { %4799 = vst [vmem:[#allocation71_spill] sm:$0xff] %v3658_v43  ;;  %4800 = vst [vmem:[#allocation72_spill] sm:$0xff] %v3663_v47  ;;  %v3668_v46 = vld [vmem:[%s4661_s5 + $0x30] sm:$0xff]  ;;  %v3673_v45 = vld [vmem:[%s4661_s5 + $0x38] sm:$0xff] }
  0x39   : > { %4801 = vst [vmem:[#allocation73_spill] sm:$0xff] %v3668_v46  ;;  %4802 = vst [vmem:[#allocation74_spill] sm:$0xff] %v3673_v45  ;;  %v3678_v44 = vld [vmem:[%s4661_s5 + $0x40] sm:$0xff]  ;;  %v3683_v43 = vld [vmem:[%s4661_s5 + $0x48] sm:$0xff] }
  0x3a   : > { %4803 = vst [vmem:[#allocation75_spill] sm:$0xff] %v3678_v44  ;;  %4804 = vst [vmem:[#allocation76_spill] sm:$0xff] %v3683_v43  ;;  %v3688_v47 = vld [vmem:[%s4661_s5 + $0x50] sm:$0xff]  ;;  %v3693_v46 = vld [vmem:[%s4661_s5 + $0x58] sm:$0xff] }
  0x3b   : > { %4805 = vst [vmem:[#allocation77_spill] sm:$0xff] %v3688_v47  ;;  %4806 = vst [vmem:[#allocation78_spill] sm:$0xff] %v3693_v46  ;;  %v3698_v45 = vld [vmem:[%s4661_s5 + $0x60] sm:$0xff]  ;;  %v3703_v44 = vld [vmem:[%s4661_s5 + $0x68] sm:$0xff] }
  0x3c   : > { %4807 = vst [vmem:[#allocation79_spill] sm:$0xff] %v3698_v45  ;;  %4808 = vst [vmem:[#allocation80_spill] sm:$0xff] %v3703_v44  ;;  %v3708_v43 = vld [vmem:[%s4661_s5 + $0x70] sm:$0xff]  ;;  %v3713_v47 = vld [vmem:[%s4661_s5 + $0x78] sm:$0xff] }
  0x3d   : > { %4809 = vst [vmem:[#allocation81_spill] sm:$0xff] %v3708_v43  ;;  %4810 = vst [vmem:[#allocation82_spill] sm:$0xff] %v3713_v47  ;;  %v3718_v46 = vld [vmem:[%s4662_s6] sm:$0xff]  ;;  %v3723_v45 = vld [vmem:[%s4662_s6 + $0x8] sm:$0xff] }
  0x3e   : > { %4811 = vst [vmem:[#allocation83_spill] sm:$0xff] %v3718_v46  ;;  %4812 = vst [vmem:[#allocation84_spill] sm:$0xff] %v3723_v45  ;;  %v3728_v44 = vld [vmem:[%s4662_s6 + $0x10] sm:$0xff]  ;;  %v3733_v47 = vld [vmem:[%s4662_s6 + $0x18] sm:$0xff] }
  0x3f   : > { %4813 = vst [vmem:[#allocation85_spill] sm:$0xff] %v3728_v44  ;;  %4814 = vst [vmem:[#allocation86_spill] sm:$0xff] %v3733_v47  ;;  %v3738_v43 = vld [vmem:[%s4662_s6 + $0x20] sm:$0xff]  ;;  %v3743_v42 = vld [vmem:[%s4662_s6 + $0x28] sm:$0xff] }
  0x40   : > { %4815 = vst [vmem:[#allocation87_spill] sm:$0xff] %v3738_v43  ;;  %4816 = vst [vmem:[#allocation88_spill] sm:$0xff] %v3743_v42  ;;  %v3748_v41 = vld [vmem:[%s4662_s6 + $0x30] sm:$0xff]  ;;  %v3753_v40 = vld [vmem:[%s4662_s6 + $0x38] sm:$0xff] }
  0x41   : > { %4817 = vst [vmem:[#allocation89_spill] sm:$0xff] %v3748_v41  ;;  %4818 = vst [vmem:[#allocation90_spill] sm:$0xff] %v3753_v40  ;;  %v3758_v39 = vld [vmem:[%s4662_s6 + $0x40] sm:$0xff]  ;;  %v3763_v38 = vld [vmem:[%s4662_s6 + $0x48] sm:$0xff] }
  0x42   : > { %4819 = vst [vmem:[#allocation91_spill] sm:$0xff] %v3758_v39  ;;  %4820 = vst [vmem:[#allocation92_spill] sm:$0xff] %v3763_v38  ;;  %v3768_v37 = vld [vmem:[%s4662_s6 + $0x50] sm:$0xff]  ;;  %v3773_v36 = vld [vmem:[%s4662_s6 + $0x58] sm:$0xff] }
  0x43   : > { %4821 = vst [vmem:[#allocation93_spill] sm:$0xff] %v3768_v37  ;;  %4822 = vst [vmem:[#allocation94_spill] sm:$0xff] %v3773_v36  ;;  %v3778_v35 = vld [vmem:[%s4662_s6 + $0x60] sm:$0xff]  ;;  %v3783_v34 = vld [vmem:[%s4662_s6 + $0x68] sm:$0xff] }
  0x44   : > { %4823 = vst [vmem:[#allocation95_spill] sm:$0xff] %v3778_v35  ;;  %4824 = vst [vmem:[#allocation96_spill] sm:$0xff] %v3783_v34  ;;  %v3788_v33 = vld [vmem:[%s4662_s6 + $0x70] sm:$0xff]  ;;  %v3793_v32 = vld [vmem:[%s4662_s6 + $0x78] sm:$0xff] }
  0x45   : > { %4825 = vst [vmem:[#allocation97_spill] sm:$0xff] %v3788_v33  ;;  %4826 = vst [vmem:[#allocation98_spill] sm:$0xff] %v3793_v32  ;;  %v3798_v37 = vld [vmem:[%s4663_s7] sm:$0xff] }
  0x46   : > { %4827 = vst [vmem:[#allocation99_spill] sm:$0xff] %v3798_v37  ;;  %v3803_v35 = vld [vmem:[%s4664_s8] sm:$0xff] }
  0x47   : > { %4828 = vst [vmem:[#allocation100_spill] sm:$0xff] %v3803_v35 }
  0x48 LB: >> { %v4829_v15 = vld [vmem:[#allocation21_spill] sm:$0xff]  ;;  %v4830_v14 = vld [vmem:[#allocation20_spill] sm:$0xff]  ;;  %v4831_v13 = vld [vmem:[#allocation19_spill] sm:$0xff]  ;;  %v4704_v33 = vmov 2   ;;  %v4706_v39 = vmov 1   ;;  %v4700_v37 = vmov 0   ;;  %s3199_s14 = sphi %s3806_s14, %s437_s14  }
  0x49   : >> { %v4832_v12 = vld [vmem:[#allocation18_spill] sm:$0xff]  ;;  %v4833_v11 = vld [vmem:[#allocation17_spill] sm:$0xff]  ;;  %v4834_v10 = vld [vmem:[#allocation16_spill] sm:$0xff]  ;;  %2719 = vset.pattern.permute.xlu0 %v4704_v33  ;;  %2718 = vset.pattern.permute.xlu1 %v4706_v39  ;;  %s2466_s24 = sshll.u32 %s3199_s14, 9  ;;  %s437_s14 = sadd.s32 1, %s3199_s14  }
  0x4a   : >> { %v4835_v9 = vld [vmem:[#allocation15_spill] sm:$0xff]  ;;  %v4836_v8 = vld [vmem:[#allocation14_spill] sm:$0xff]  ;;  %v4837_v7 = vld [vmem:[#allocation13_spill] sm:$0xff]  ;;  %s3927_s16 = sshra.s32 %s2466_s24, 7  ;;  %p434_p11 = scmp.ge.s32.totalorder %s437_s14, 4  }
  0x4b   : >> { %v4838_v6 = vld [vmem:[#allocation12_spill] sm:$0xff]  ;;  %v4839_v5 = vld [vmem:[#allocation11_spill] sm:$0xff]  ;;  %v4840_v4 = vld [vmem:[#allocation10_spill] sm:$0xff]  ;;  %s2467_s18 = sshll.u32 %s3927_s16, 2  ;;  %s2468_s22 = sshll.u32 %s3927_s16, 3 }
  0x4c   : >> { %v4841_v3 = vld [vmem:[#allocation9_spill] sm:$0xff]  ;;  %v4842_v2 = vld [vmem:[#allocation8_spill] sm:$0xff]  ;;  %v4843_v1 = vld [vmem:[#allocation7_spill] sm:$0xff]  ;;  %s442_s17 = scalar_lea.vmem %s3403_s23, %s2467_s18  ;;  %s2371_s25 = scalar_lea.vmem %s326_s28, %s2468_s22 [#allocation2] }
  0x4d   : >> { %v4844_v0 = vld [vmem:[#allocation6_spill] sm:$0xff]  ;;  %v4846_v17 = vld [vmem:[#allocation23_spill] sm:$0xff]  ;;  %v4847_v18 = vld [vmem:[#allocation24_spill] sm:$0xff]  ;;  %s2474_s26 = sshll.u32 (%p434_p11), %s3277_s13, 11  ;;  %s2391_s16 = sshll.u32 (%p434_p11), %s326_s28, 4  ;;  %s2392_s16 = int_to_ptr.vmem [resolvable:$true] %s2391_s16 }
  0x4e   : >> { %856 = vperm.xlu0 %2719, %v4844_v0   ;;  %628 = vperm.xlu1 %2718, %v4844_v0   ;;  %v4845_v16 = vld [vmem:[#allocation22_spill] sm:$0xff]  ;;  %v4849_v19 = vld [vmem:[#allocation25_spill] sm:$0xff]  ;;  %v4850_v22 = vld [vmem:[#allocation28_spill] sm:$0xff]  ;;  %s4616_s24 = scalar_lea.hbm (%p434_p11), %s4665_s9, %s2474_s26  ;;  %s4949_s18 = sand.u32 (%p434_p11), 1, %s3187_s10  }
  0x4f   : >> { %v4848_v20 = vld [vmem:[#allocation26_spill] sm:$0xff]  ;;  %v4852_v26 = vld [vmem:[#allocation32_spill] sm:$0xff]  ;;  %v4853_v21 = vld [vmem:[#allocation27_spill] sm:$0xff]  ;;  %s3129_s22 = scalar_lea.vmem (%p434_p11), %s2392_s16, 2048  ;;  %s3205_s23 = smov (%p434_p11), [#allocation2]  }
  0x50   : >> { %v4851_v24 = vld [vmem:[#allocation30_spill] sm:$0xff]  ;;  %v4855_v31 = vld [vmem:[#allocation37_spill] sm:$0xff]  ;;  %v4857_v51 = vld [vmem:[#allocation55_spill] sm:$0xff]  ;;  %p3130_p12 = scmp.ne.s32.totalorder (%p434_p11), %s2392_s16, %s3129_s22  ;;  %s3133_s14 = sshll.u32 (%p434_p11), %s3205_s23, 4  ;;  %s3134_s14 = int_to_ptr.vmem [resolvable:$false] %s3133_s14 }
  0x51   : >> { %v4854_v28 = vld [vmem:[#allocation34_spill] sm:$0xff]  ;;  %v4858_v53 = vld [vmem:[#allocation56_spill] sm:$0xff]  ;;  %v4859_v23 = vld [vmem:[#allocation29_spill] sm:$0xff]  ;;  %p3136_p1 = scmp.lt.s32.totalorder (%p434_p11), %s2392_s16, %s3134_s14 }
  0x52   : >> { %864 = vperm.xlu0 %2719, %v4842_v2   ;;  %632 = vperm.xlu1 %2718, %v4843_v1   ;;  %v4856_v49 = vld [vmem:[#allocation54_spill] sm:$0xff]  ;;  %v4861_v57 = vld [vmem:[#allocation60_spill] sm:$0xff]  ;;  %v4866_v25 = vld [vmem:[#allocation31_spill] sm:$0xff]  ;;  %p3131_p13 = pnand (%p434_p11), %p3130_p12, %p3294_p5 }
  0x53   : >> { %v4860_v55 = vld [vmem:[#allocation58_spill] sm:$0xff]  ;;  %v4863_v61 = vld [vmem:[#allocation64_spill] sm:$0xff]  ;;  %v4879_v27 = vld [vmem:[#allocation33_spill] sm:$0xff] }
  0x54   : >> { %v4862_v59 = vld [vmem:[#allocation62_spill] sm:$0xff]  ;;  %v4867_v45 = vld [vmem:[#allocation84_spill] sm:$0xff]  ;;  %v4889_v29 = vld [vmem:[#allocation35_spill] sm:$0xff]  ;;  %p3132_p0 = pneg (%p434_p11), %p3131_p13 }
  0x55   : >> { %v4864_v63 = vld [vmem:[#allocation66_spill] sm:$0xff]  ;;  %v4871_v42 = vld [vmem:[#allocation88_spill] sm:$0xff] }
  0x56   : >> { %876 = vperm.xlu0 %2719, %v4839_v5   ;;  %2720 = vset.pattern.permute.xlu1 %v4704_v33  ;;  %v4868_v47 = vld [vmem:[#allocation86_spill] sm:$0xff]  ;;  %v4875_v38 = vld [vmem:[#allocation92_spill] sm:$0xff] }
  0x57   : >> { %860 = vperm.xlu1 %2720, %v4843_v1   ;;  %v4872_v40 = vld [vmem:[#allocation90_spill] sm:$0xff]  ;;  %v4880_v34 = vld [vmem:[#allocation96_spill] sm:$0xff] }
  0x58   : >> { %v4877_v36 = vld [vmem:[#allocation94_spill] sm:$0xff]  ;;  %v4890_v30 = vld [vmem:[#allocation36_spill] sm:$0xff] }
  0x59   : >> { %v4882_v32 = vld [vmem:[#allocation98_spill] sm:$0xff] }
  0x5a   : >> { %2727 = vset.pattern.permute.xlu0 %v4706_v39 }
  0x5b   : >> { %644 = vperm.xlu0 %2727, %v4840_v4   ;;  %2721 = vset.pattern.permute.xlu1 %v4700_v37 }
  0x5c   : >> { %457 = vperm.xlu1 %2721, %v4842_v2  }
  0x5f   : >> { %656 = vperm.xlu0 %2727, %v4837_v7  }
  0x60   : >> { %2722 = vset.pattern.permute.xlu1 %v4706_v39 }
  0x61   : >> { %636 = vperm.xlu1 %2722, %v4842_v2  }
  0x63   : >> { %664 = vperm.xlu0 %2727, %v4835_v9  }
  0x65   : >> { %640 = vperm.xlu1 %2722, %v4841_v3  }
  0x67   : >> { %672 = vperm.xlu0 %2727, %v4833_v11  }
  0x69   : >> { %2723 = vset.pattern.permute.xlu1 %v4704_v33 }
  0x6a   : >> { %868 = vperm.xlu1 %2723, %v4841_v3  }
  0x6b   : >> { %680 = vperm.xlu0 %2727, %v4831_v13  }
  0x6e   : >> { %2724 = vset.pattern.permute.xlu1 %v4700_v37 }
  0x6f   : >> { %688 = vperm.xlu0 %2727, %v4829_v15   ;;  %1085 = vperm.xlu1 %2724, %v4845_v16  }
  0x73   : >> { %2742 = vset.pattern.permute.xlu0 %v4700_v37  ;;  %467 = vperm.xlu1 %2724, %v4840_v4  }
  0x74   : >> { %447 = vperm.xlu0 %2742, %v4844_v0  }
  0x77   : >> { %472 = vperm.xlu1 %2724, %v4839_v5  }
  0x78   : >> { %452 = vperm.xlu0 %2742, %v4843_v1   ;;  %v4865_v1 = vmov 0  }
  0x7b   : >> { %2725 = vset.pattern.permute.xlu1 %v4706_v39 }
  0x7c   : >> { %462 = vperm.xlu0 %2742, %v4841_v3   ;;  %648 = vperm.xlu1 %2725, %v4839_v5  }
  0x80   : >> { %1090 = vperm.xlu0 %2742, %v4846_v17   ;;  %2726 = vset.pattern.permute.xlu1 %v4704_v33 }
  0x81   : >> { %872 = vperm.xlu1 %2726, %v4840_v4   ;;  %v4870_v4 = vmov 1  }
  0x84   : >> { %477 = vperm.xlu0 %2742, %v4838_v6  }
  0x85   : >> { %2728 = vset.pattern.permute.xlu1 %v4700_v37 }
  0x86   : >> { %1095 = vperm.xlu1 %2728, %v4847_v18  }
  0x88   : >> { %1105 = vperm.xlu0 %2742, %v4848_v20  }
  0x8a   : >> { %1100 = vperm.xlu1 %2728, %v4849_v19  }
  0x8c   : >> { %492 = vperm.xlu0 %2742, %v4835_v9  }
  0x8e   : >> { %482 = vperm.xlu1 %2728, %v4837_v7  }
  0x90   : >> { %1115 = vperm.xlu0 %2742, %v4850_v22   ;;  %v444_v22 = vld [vmem:[%s442_s17 + $0x8] sm:$0x77] }
  0x92   : >> { %2729 = vset.pattern.permute.xlu1 %v4706_v39 }
  0x93   : >> { %652 = vperm.xlu1 %2729, %v4838_v6  }
  0x94   : >> { %502 = vperm.xlu0 %2742, %v4833_v11  }
  0x97   : >> { %2730 = vset.pattern.permute.xlu1 %v4704_v33 }
  0x98   : >> { %1125 = vperm.xlu0 %2742, %v4851_v24   ;;  %880 = vperm.xlu1 %2730, %v4838_v6  }
  0x9c   : >> { %512 = vperm.xlu0 %2742, %v4831_v13   ;;  %884 = vperm.xlu1 %2730, %v4837_v7   ;;  %v4873_v7 = vmov 2  }
  0xa0   : >> { %1135 = vperm.xlu0 %2742, %v4852_v26   ;;  %2731 = vset.pattern.permute.xlu1 %v4700_v37 }
  0xa1   : >> { %1110 = vperm.xlu1 %2731, %v4853_v21   ;;  %v443_v21 = vld [vmem:[%s442_s17] sm:$0x77]  ;;  %s2377_s17 = scalar_lea.sflag (%p434_p11), [#allocation3], %s4949_s18 }
  0xa4   : >> { %522 = vperm.xlu0 %2742, %v4829_v15  }
  0xa5   : >> { %487 = vperm.xlu1 %2731, %v4836_v8  }
  0xa8   : >> { %1145 = vperm.xlu0 %2742, %v4854_v28  }
  0xa9   : >> { %2732 = vset.pattern.permute.xlu1 %v4706_v39 }
  0xaa   : >> { %660 = vperm.xlu1 %2732, %v4836_v8  }
  0xac   : >> { %1160 = vperm.xlu0 %2742, %v4855_v31  }
  0xae   : >> { %2733 = vset.pattern.permute.xlu1 %v4704_v33 }
  0xaf   : >> { %888 = vperm.xlu1 %2733, %v4836_v8  }
  0xb0   : >> { %1298 = vperm.xlu0 %2742, %v4856_v49  }
  0xb3   : >> { %892 = vperm.xlu1 %2733, %v4835_v9  }
  0xb4   : >> { %1308 = vperm.xlu0 %2742, %v4857_v51  }
  0xb7   : >> { %2734 = vset.pattern.permute.xlu1 %v4700_v37 }
  0xb8   : >> { %1318 = vperm.xlu0 %2742, %v4858_v53   ;;  %1120 = vperm.xlu1 %2734, %v4859_v23  }
  0xbc   : >> { %1328 = vperm.xlu0 %2742, %v4860_v55   ;;  %497 = vperm.xlu1 %2734, %v4834_v10  }
  0xc0   : >> { %1338 = vperm.xlu0 %2742, %v4861_v57   ;;  %2735 = vset.pattern.permute.xlu1 %v4706_v39 }
  0xc1   : >> { %668 = vperm.xlu1 %2735, %v4834_v10  }
  0xc4   : >> { %1348 = vperm.xlu0 %2742, %v4862_v59  }
  0xc5   : >> { %2736 = vset.pattern.permute.xlu1 %v4704_v33 }
  0xc6   : >> { %896 = vperm.xlu1 %2736, %v4834_v10  }
  0xc8   : >> { %1358 = vperm.xlu0 %2742, %v4863_v61  }
  0xca   : >> { %900 = vperm.xlu1 %2736, %v4833_v11   ;;  %v527_v11 = vlaneseq }
  0xcc   : >> { %1368 = vperm.xlu0 %2742, %v4864_v63   ;;  %v528_v17 = vshrl.u32 %v527_v11, 7 }
  0xcd   : >> { %v3891_v37 = vpop.permute.xlu1 %628  ;;  %v3893_v0 = vpop.permute.xlu0 %856 }
  0xce   : >> { %2737 = vset.pattern.permute.xlu1 %v4865_v1  ;;  %v693_v19 = vsub.s32 1, %v528_v17  ;;  %v697_v20 = vsub.s32 5, %v528_v17  ;;  %v921_v23 = vsub.s32 2, %v528_v17  ;;  %v925_v24 = vsub.s32 6, %v528_v17 }
  0xcf   : >> { %1130 = vperm.xlu1 %2737, %v4866_v25   ;;  %v529_v11 = vsub.s32 0, %v528_v17  ;;  %v533_v31 = vsub.s32 4, %v528_v17 }
  0xd0   : >> { %1764 = vperm.xlu0 %2742, %v4867_v45   ;;  %v698_v28 = vrot.slane %v443_v21, %v697_v20 }
  0xd1   : >> { %v3898_v33 = vpop.permute.xlu1 %632  ;;  %v3900_v39 = vpop.permute.xlu0 %864  ;;  %v530_v45 = vrot.slane %v443_v21, %v529_v11  ;;  %v534_v55 = vrot.slane %v443_v21, %v533_v31  ;;  %v542_v17 = vrot.slane %v444_v22, %v533_v31 }
  0xd2   : >> { %v3955_v53 = vrot.slane %v698_v28, %v693_v19 }
  0xd3   : >> { %507 = vperm.xlu1 %2737, %v4832_v12  }
  0xd4   : >> { %1774 = vperm.xlu0 %2742, %v4868_v47   ;;  %v538_v47 = vrot.slane %v444_v22, %v529_v11 }
  0xd5   : >> { %v3904_v2 = vpop.permute.xlu0 %876 }
  0xd6   : >> { %4869 = vst [vmem:[#allocation101_spill] sm:$0xff] %v3904_v2  ;;  %v3906_v3 = vpop.permute.xlu1 %860 }
  0xd7   : >> { %2738 = vset.pattern.permute.xlu1 %v4870_v4 }
  0xd8   : >> { %1784 = vperm.xlu0 %2742, %v4871_v42   ;;  %676 = vperm.xlu1 %2738, %v4832_v12   ;;  %v934_v42 = vrot.slane %v444_v22, %v925_v24 }
  0xda   : >> { %v3911_v5 = vpop.permute.xlu0 %644  ;;  %v3971_v28 = vrot.slane %v934_v42, %v921_v23 }
  0xdb   : >> { %v3913_v6 = vpop.permute.xlu1 %457 }
  0xdc   : >> { %1794 = vperm.xlu0 %2742, %v4872_v40   ;;  %2739 = vset.pattern.permute.xlu1 %v4873_v7  ;;  %v926_v40 = vrot.slane %v443_v21, %v925_v24 }
  0xdd   : >> { %904 = vperm.xlu1 %2739, %v4832_v12  }
  0xde   : >> { %v3918_v8 = vpop.permute.xlu0 %656  ;;  %v3966_v24 = vrot.slane %v926_v40, %v921_v23 }
  0xdf   : >> { %4874 = vst [vmem:[#allocation102_spill] sm:$0xff] %v3918_v8 }
  0xe0   : >> { %1804 = vperm.xlu0 %2742, %v4875_v38   ;;  %v3922_v9 = vpop.permute.xlu1 %636  ;;  %v922_v38 = vrot.slane %v443_v21, %v921_v23  ;;  %v3999_v40 = vmul.f32 %v3966_v24, %v3893_v0  ;;  %v964_v63 = vmul.f32 %v3966_v24, %v3900_v39 }
  0xe1   : >> { %908 = vperm.xlu1 %2739, %v4831_v13  }
  0xe2   : >> { %v3925_v10 = vpop.permute.xlu0 %664  ;;  %v3964_v59 = vrot.slane %v922_v38, %v921_v23 }
  0xe3   : >> { %4876 = vst [vmem:[#allocation103_spill] sm:$0xff] %v3925_v10  ;;  %v736_v10 = vmul.f32 %v3955_v53, %v3922_v9 }
  0xe4   : >> { %1814 = vperm.xlu0 %2742, %v4877_v36   ;;  %v3930_v16 = vpop.permute.xlu1 %640  ;;  %v706_v36 = vrot.slane %v444_v22, %v697_v20  ;;  %v955_v38 = vmul.f32 %v3964_v59, %v3893_v0  ;;  %v4022_v61 = vmul.f32 %v3964_v59, %v3900_v39 }
  0xe5   : >> { %2740 = vset.pattern.permute.xlu1 %v4865_v1 }
  0xe6   : >> { %v3934_v12 = vpop.permute.xlu0 %672  ;;  %1140 = vperm.xlu1 %2740, %v4879_v27   ;;  %v694_v27 = vrot.slane %v443_v21, %v693_v19  ;;  %v3961_v20 = vrot.slane %v706_v36, %v693_v19  ;;  %v3973_v21 = vrot.slane %v530_v45, %v529_v11  ;;  %v3987_v36 = vrot.slane %v542_v17, %v529_v11 }
  0xe7   : >> { %4878 = vst [vmem:[#allocation104_spill] sm:$0xff] %v3934_v12  ;;  %4886 = vst [vmem:[#allocation109_spill] sm:$0xff] %v4022_v61  ;;  %v960_v12 = vmul.f32 %v3966_v24, %v3906_v3 }
  0xe8   : >> { %1824 = vperm.xlu0 %2742, %v4880_v34   ;;  %v702_v34 = vrot.slane %v444_v22, %v693_v19  ;;  %v3953_v51 = vrot.slane %v694_v27, %v693_v19  ;;  %v571_v8 = vmul.f32 %v3973_v21, %v3913_v6 }
  0xe9   : >> { %v3939_v13 = vpop.permute.xlu1 %868 }
  0xea   : >> { %v3941_v18 = vpop.permute.xlu0 %680  ;;  %517 = vperm.xlu1 %2740, %v4830_v14   ;;  %v735_v35 = vmul.f32 %v3953_v51, %v3922_v9 }
  0xeb   : >> { %4881 = vst [vmem:[#allocation105_spill] sm:$0xff] %v3941_v18 }
  0xec   : >> { %1834 = vperm.xlu0 %2742, %v4882_v32   ;;  %v930_v32 = vrot.slane %v444_v22, %v921_v23  ;;  %v3975_v22 = vrot.slane %v538_v47, %v529_v11  ;;  %v4005_v47 = vmul.f32 %v3971_v28, %v3893_v0 }
  0xee   : >> { %v3945_v25 = vpop.permute.xlu1 %1085  ;;  %v3947_v26 = vpop.permute.xlu0 %688  ;;  %2741 = vset.pattern.permute.xlu1 %v4870_v4  ;;  %v3959_v4 = vrot.slane %v702_v34, %v693_v19  ;;  %v3969_v27 = vrot.slane %v930_v32, %v921_v23  ;;  %v727_v19 = vmul.f32 %v3953_v51, %v3891_v37  ;;  %v3985_v34 = vrot.slane %v534_v55, %v529_v11 }
  0xef   : >> { %4883 = vst [vmem:[#allocation106_spill] sm:$0xff] %v3947_v26  ;;  %684 = vperm.xlu1 %2741, %v4830_v14   ;;  %v3993_v32 = vmul.f32 %v3961_v20, %v3891_v37  ;;  %v731_v55 = vmul.f32 %v3953_v51, %v3898_v33  ;;  %v732_v11 = vmul.f32 %v3955_v53, %v3898_v33 }
  0xf0   : >> { %v729_v23 = vmul.f32 %v3959_v4, %v3891_v37  ;;  %v957_v45 = vmul.f32 %v3969_v27, %v3893_v0  ;;  %v733_v17 = vmul.f32 %v3959_v4, %v3898_v33  ;;  %v966_v26 = vmul.f32 %v3971_v28, %v3900_v39 }
  0xf1   : >> { %v737_v41 = vmul.f32 %v3959_v4, %v3922_v9  ;;  %v572_v46 = vmul.f32 %v3985_v34, %v3913_v6 }
  0xf2   : >> { %v3951_v49 = vpop.permute.xlu1 %467 }
  0xf3   : >> { %4884 = vst [vmem:[#allocation107_spill] sm:$0xff] %v3951_v49  ;;  %v3957_v57 = vpop.permute.xlu0 %447  ;;  %2743 = vset.pattern.permute.xlu1 %v4873_v7  ;;  %v3983_v7 = vmul.f32 %v3955_v53, %v3891_v37 }
  0xf4   : >> { %912 = vperm.xlu1 %2743, %v4830_v14   ;;  %v563_v37 = vmul.f32 %v3973_v21, %v3957_v57  ;;  %v734_v14 = vmul.f32 %v3961_v20, %v3898_v33  ;;  %v565_v0 = vmul.f32 %v3975_v22, %v3957_v57  ;;  %v959_v33 = vmul.f32 %v3964_v59, %v3906_v3 }
  0xf6   : >> { %v3977_v31 = vpop.permute.xlu1 %472  ;;  %v791_v43 = vadd.f32 %v727_v19, %v563_v37  ;;  %v793_v62 = vadd.f32 %v729_v23, %v565_v0  ;;  %v573_v19 = vmul.f32 %v3975_v22, %v3913_v6 }
  0xf7   : >> { %4885 = vst [vmem:[#allocation108_spill] sm:$0xff] %v3977_v31  ;;  %v453_v42 = vpop.permute.xlu0 %452  ;;  %v962_v31 = vmul.f32 %v3971_v28, %v3906_v3 }
  0xf8   : >> { %916 = vperm.xlu1 %2743, %v4829_v15   ;;  %v4028_v15 = vmul.f32 %v3969_v27, %v3900_v39  ;;  %v738_v39 = vmul.f32 %v3961_v20, %v3922_v9  ;;  %v567_v44 = vmul.f32 %v3973_v21, %v453_v42  ;;  %v568_v60 = vmul.f32 %v3985_v34, %v453_v42 }
  0xf9   : >> { %v961_v9 = vmul.f32 %v3969_v27, %v3906_v3  ;;  %v569_v37 = vmul.f32 %v3975_v22, %v453_v42  ;;  %v570_v23 = vmul.f32 %v3987_v36, %v453_v42  ;;  %v1019_v56 = vadd.f32 %v955_v38, %v791_v43 }
  0xfa   : >> { %4887 = vst [vmem:[#allocation110_spill] sm:$0xff] %v4028_v15  ;;  %v795_v2 = vadd.f32 %v731_v55, %v567_v44  ;;  %v4068_v54 = vadd.f32 %v737_v41, %v573_v19  ;;  %v740_v15 = vmul.f32 %v3955_v53, %v3930_v16  ;;  %v1021_v61 = vadd.f32 %v957_v45, %v793_v62 }
  0xfb   : >> { %v4032_v18 = vpop.permute.xlu1 %648  ;;  %v463_v58 = vpop.permute.xlu0 %462  ;;  %v796_v3 = vadd.f32 %v732_v11, %v568_v60  ;;  %v742_v43 = vmul.f32 %v3961_v20, %v3930_v16  ;;  %v798_v44 = vadd.f32 %v734_v14, %v570_v23  ;;  %v566_v60 = vmul.f32 %v3987_v36, %v3957_v57 }
  0xfc   : >> { %4888 = vst [vmem:[#allocation111_spill] sm:$0xff] %v4032_v18  ;;  %2744 = vset.pattern.permute.xlu1 %v4865_v1  ;;  %v574_v1 = vmul.f32 %v3987_v36, %v3913_v6  ;;  %v4066_v18 = vadd.f32 %v735_v35, %v571_v8  ;;  %v739_v6 = vmul.f32 %v3953_v51, %v3930_v16 }
  0xfd   : >> { %1150 = vperm.xlu1 %2744, %v4889_v29   ;;  %v800_v29 = vadd.f32 %v736_v10, %v572_v46  ;;  %v741_v8 = vmul.f32 %v3959_v4, %v3930_v16  ;;  %v564_v10 = vmul.f32 %v3985_v34, %v3957_v57  ;;  %v797_v35 = vadd.f32 %v733_v17, %v569_v37 }
  0xfe   : >> { %v802_v49 = vadd.f32 %v738_v39, %v574_v1  ;;  %v575_v41 = vmul.f32 %v3973_v21, %v463_v58  ;;  %v576_v46 = vmul.f32 %v3985_v34, %v463_v58  ;;  %v1163_v42 = vadd.f32 %v3945_v25, %v1019_v56 }
  0xff   : >> { %v1091_v38 = vpop.permute.xlu0 %1090  ;;  %v1028_v62 = vadd.f32 %v964_v63, %v800_v29  ;;  %v578_v45 = vmul.f32 %v3987_v36, %v463_v58  ;;  %v1023_v55 = vadd.f32 %v959_v33, %v795_v2  ;;  %v967_v17 = vmul.f32 %v3964_v59, %v3939_v13 }
 0x100   : >> { %v4064_v0 = vpop.permute.xlu1 %872  ;;  %v1165_v16 = vadd.f32 %v3945_v25, %v1021_v61  ;;  %v1024_v14 = vadd.f32 %v960_v12, %v796_v3  ;;  %v1030_v39 = vadd.f32 %v966_v26, %v802_v49  ;;  %v792_v29 = vadd.f32 %v3983_v7, %v564_v10 }
 0x101   : >> { %1155 = vperm.xlu1 %2744, %v4890_v30   ;;  %v803_v63 = vadd.f32 %v739_v6, %v575_v41  ;;  %v1025_v57 = vadd.f32 %v961_v9, %v797_v35  ;;  %v1167_v19 = vadd.f32 %v1091_v38, %v1023_v55  ;;  %v577_v56 = vmul.f32 %v3975_v22, %v463_v58 }
 0x102   : >> { %v804_v1 = vadd.f32 %v740_v15, %v576_v46  ;;  %v1026_v2 = vadd.f32 %v962_v31, %v798_v44  ;;  %v1168_v33 = vadd.f32 %v1091_v38, %v1024_v14  ;;  %v794_v37 = vadd.f32 %v3993_v32, %v566_v60  ;;  %v4891_v46 = vld [vmem:[#allocation109_spill] sm:$0xff] }
 0x103   : >> { %2745 = vtanh.f32 %v1163_v42  ;;  %v806_v23 = vadd.f32 %v742_v43, %v578_v45  ;;  %v1169_v30 = vadd.f32 %v1091_v38, %v1025_v57  ;;  %v968_v12 = vmul.f32 %v3966_v24, %v3939_v13  ;;  %v4893_v42 = vld [vmem:[#allocation107_spill] sm:$0xff]  ;;  %v4895_v57 = vld [vmem:[#allocation101_spill] sm:$0xff] }
 0x104   : >> { %v970_v26 = vmul.f32 %v3971_v28, %v3939_v13  ;;  %2747 = vtanh.f32 %v1165_v16  ;;  %v1170_v49 = vadd.f32 %v1091_v38, %v1026_v2  ;;  %v1020_v15 = vadd.f32 %v3999_v40, %v792_v29  ;;  %v4894_v16 = vld [vmem:[#allocation57_spill] sm:$0xff] }
 0x105   : >> { %v4087_v11 = vpop.permute.xlu1 %1095  ;;  %1293 = vperm.xlu1 %2744, %v3558_v48   ;;  %2749 = vtanh.f32 %v1167_v19  ;;  %v1031_v31 = vadd.f32 %v967_v17, %v803_v63  ;;  %v805_v7 = vadd.f32 %v741_v8, %v577_v56  ;;  %v1032_v9 = vadd.f32 %v968_v12, %v804_v1 }
 0x106   : >> { %v1172_v58 = vadd.f32 %v4087_v11, %v1028_v62  ;;  %2751 = vtanh.f32 %v1168_v33  ;;  %v1174_v32 = vadd.f32 %v4087_v11, %v1030_v39  ;;  %v1022_v6 = vadd.f32 %v4005_v47, %v794_v37 }
 0x107   : >> { %2753 = vtanh.f32 %v1169_v30  ;;  %v1034_v3 = vadd.f32 %v970_v26, %v806_v23  ;;  %v969_v41 = vmul.f32 %v3969_v27, %v3939_v13  ;;  %v743_v8 = vmul.f32 %v3953_v51, %v3911_v5  ;;  %v4892_v13 = vld [vmem:[#allocation110_spill] sm:$0xff] }
 0x108   : >> { %2755 = vtanh.f32 %v1170_v49  ;;  %v744_v47 = vmul.f32 %v3955_v53, %v3911_v5  ;;  %v1164_v44 = vadd.f32 %v3945_v25, %v1020_v15  ;;  %v1027_v38 = vadd.f32 %v4891_v46, %v4066_v18  ;;  %v4896_v49 = vld [vmem:[#allocation59_spill] sm:$0xff] }
 0x109   : >> { %v1101_v61 = vpop.permute.xlu1 %1100  ;;  %1303 = vperm.xlu1 %2744, %v3568_v50   ;;  %2757 = vtanh.f32 %v1172_v58  ;;  %v1033_v30 = vadd.f32 %v969_v41, %v805_v7  ;;  %v1029_v62 = vadd.f32 %v4892_v13, %v4068_v54  ;;  %v1166_v60 = vadd.f32 %v3945_v25, %v1022_v6  ;;  %v4133_v54 = vpop.permute.xlu0 %477 }
 0x10a   : >> { %v1175_v10 = vadd.f32 %v1101_v61, %v1031_v31  ;;  %v1176_v40 = vadd.f32 %v1101_v61, %v1032_v9  ;;  %v1178_v43 = vadd.f32 %v1101_v61, %v1034_v3  ;;  %2759 = vtanh.f32 %v1174_v32  ;;  %v4897_v31 = vld [vmem:[#allocation111_spill] sm:$0xff] }
 0x10b   : >> { %v579_v45 = vmul.f32 %v3973_v21, %v4893_v42  ;;  %v580_v55 = vmul.f32 %v3985_v34, %v4893_v42  ;;  %v1177_v17 = vadd.f32 %v1101_v61, %v1033_v30  ;;  %v745_v18 = vmul.f32 %v3959_v4, %v3911_v5 }
 0x10c   : >> { %2761 = vtanh.f32 %v1175_v10  ;;  %v581_v25 = vmul.f32 %v3975_v22, %v4893_v42  ;;  %v1171_v29 = vadd.f32 %v4087_v11, %v1027_v38  ;;  %v4140_v19 = vmul.f32 %v3964_v59, %v4895_v57 }
 0x10d   : >> { %v4105_v35 = vpop.permute.xlu1 %482  ;;  %1313 = vperm.xlu1 %2744, %v3578_v52   ;;  %2763 = vtanh.f32 %v1176_v40  ;;  %v4127_v39 = vpop.eup %2745  ;;  %v4144_v56 = vmul.f32 %v3966_v24, %v4895_v57  ;;  %v1173_v1 = vadd.f32 %v4087_v11, %v1029_v62  ;;  %v4151_v33 = vmul.f32 %v3969_v27, %v4895_v57  ;;  %v4898_v40 = vld [vmem:[#allocation108_spill] sm:$0xff]  ;;  %v4899_v62 = vld [vmem:[#allocation61_spill] sm:$0xff] }
 0x10e   : >> { %2765 = vtanh.f32 %v1178_v43  ;;  %v4136_v63 = vpop.eup %2747  ;;  %v746_v37 = vmul.f32 %v3961_v20, %v3911_v5  ;;  %v582_v23 = vmul.f32 %v3987_v36, %v4893_v42  ;;  %v807_v12 = vadd.f32 %v743_v8, %v579_v45  ;;  %v1106_v30 = vpop.permute.xlu0 %1105 }
 0x10f   : >> { %2767 = vtanh.f32 %v1164_v44  ;;  %v4147_v2 = vpop.eup %2749  ;;  %v808_v26 = vadd.f32 %v744_v47, %v580_v55  ;;  %v971_v11 = vmul.f32 %v3964_v59, %v4064_v0  ;;  %v809_v58 = vadd.f32 %v745_v18, %v581_v25 }
 0x110   : >> { %2769 = vtanh.f32 %v1166_v60  ;;  %v4157_v61 = vpop.eup %2751  ;;  %v747_v5 = vmul.f32 %v3953_v51, %v4897_v31  ;;  %v972_v7 = vmul.f32 %v3966_v24, %v4064_v0  ;;  %v748_v6 = vmul.f32 %v3955_v53, %v4897_v31 }
 0x111   : >> { %1323 = vperm.xlu1 %2744, %v4894_v16   ;;  %2771 = vtanh.f32 %v1177_v17  ;;  %v4162_v15 = vpop.eup %2753  ;;  %v973_v3 = vmul.f32 %v3969_v27, %v4064_v0  ;;  %v974_v10 = vmul.f32 %v3971_v28, %v4064_v0  ;;  %v583_v8 = vmul.f32 %v3973_v21, %v4898_v40 }
 0x112   : >> { %v4125_v14 = vpop.permute.xlu1 %652  ;;  %2773 = vtanh.f32 %v1171_v29  ;;  %v2756_v9 = vpop.eup %2755  ;;  %v749_v43 = vmul.f32 %v3959_v4, %v4897_v31  ;;  %v750_v47 = vmul.f32 %v3961_v20, %v4897_v31  ;;  %v810_v46 = vadd.f32 %v746_v37, %v582_v23 }
 0x113   : >> { %2775 = vtanh.f32 %v1173_v1  ;;  %v2758_v41 = vpop.eup %2757  ;;  %v584_v38 = vmul.f32 %v3985_v34, %v4898_v40  ;;  %v1035_v13 = vadd.f32 %v971_v11, %v807_v12  ;;  %v3204_v0 = vmov 0.0  }
 0x114   : >> { %v2760_v44 = vpop.eup %2759  ;;  %1435 = vmatprep.mubr.f32.mxu0 %v3204_v0  ;;  %v585_v42 = vmul.f32 %v3975_v22, %v4898_v40  ;;  %v586_v45 = vmul.f32 %v3987_v36, %v4898_v40  ;;  %v811_v55 = vadd.f32 %v747_v5, %v583_v8  ;;  %v1036_v17 = vadd.f32 %v972_v7, %v808_v26  ;;  %v4900_v7 = vld [vmem:[#allocation63_spill] sm:$0xff] }
 0x115   : >> { %1333 = vperm.xlu1 %2744, %v4896_v49   ;;  %1596 = vmatprep.mubr.f32.mxu1 %v3204_v0  ;;  %v812_v25 = vadd.f32 %v748_v6, %v584_v38  ;;  %v1037_v29 = vadd.f32 %v973_v3, %v809_v58  ;;  %v1038_v1 = vadd.f32 %v974_v10, %v810_v46 }
 0x116   : >> { %v2762_v60 = vpop.eup %2761  ;;  %v1179_v37 = vadd.f32 %v1106_v30, %v1035_v13  ;;  %v978_v12 = vmul.f32 %v3971_v28, %v4895_v57  ;;  %v813_v11 = vadd.f32 %v749_v43, %v585_v42  ;;  %v814_v49 = vadd.f32 %v750_v47, %v586_v45 }
 0x117   : >> { %v4168_v32 = vpop.permute.xlu1 %880  ;;  %v2764_v18 = vpop.eup %2763  ;;  %v1180_v31 = vadd.f32 %v1106_v30, %v1036_v17  ;;  %v1181_v40 = vadd.f32 %v1106_v30, %v1037_v29  ;;  %v1182_v5 = vadd.f32 %v1106_v30, %v1038_v1  ;;  %v2477_v26 = vpack.c.bf16 %v4147_v2, %v4127_v39 }
 0x118   : >> { %v2766_v23 = vpop.eup %2765  ;;  %v2509_v6 = vpack.c.bf16 %v4162_v15, %v4136_v63  ;;  %v2479_v3 = vpack.c.bf16 %v2764_v18, %v2758_v41  ;;  %v1039_v57 = vadd.f32 %v4140_v19, %v811_v55  ;;  %2777 = vtanh.f32 %v1179_v37 }
 0x119   : >> { %1343 = vperm.xlu1 %2744, %v4899_v62   ;;  %v2768_v62 = vpop.eup %2767  ;;  %v2511_v47 = vpack.c.bf16 %v2766_v23, %v2760_v44  ;;  %v1040_v30 = vadd.f32 %v4144_v56, %v812_v25  ;;  %2779 = vtanh.f32 %v1180_v31  ;;  %v1041_v39 = vadd.f32 %v4151_v33, %v813_v11  ;;  %v4901_v56 = vld [vmem:[#allocation65_spill] sm:$0xff]  ;;  %v4902_v33 = vld [vmem:[#allocation83_spill] sm:$0xff] }
 0x11a   : >> { %v2770_v8 = vpop.eup %2769  ;;  %v2475_v58 = vpack.c.bf16 %v4157_v61, %v2768_v62  ;;  %v1042_v2 = vadd.f32 %v978_v12, %v814_v49  ;;  %2781 = vtanh.f32 %v1181_v40  ;;  %v751_v42 = vmul.f32 %v3953_v51, %v4125_v14  ;;  %v4903_v12 = vld [vmem:[#allocation102_spill] sm:$0xff]  ;;  %v4226_v49 = vpop.permute.xlu0 %492  ;;  %v4904_v62 = vld [vmem:[#allocation85_spill] sm:$0xff] }
 0x11b   : >> { %v4190_v16 = vpop.permute.xlu1 %884  ;;  %v2772_v10 = vpop.eup %2771  ;;  %v2507_v43 = vpack.c.bf16 %v2756_v9, %v2770_v8  ;;  %2783 = vtanh.f32 %v1182_v5  ;;  %v588_v17 = vmul.f32 %v3985_v34, %v4133_v54  ;;  %v752_v18 = vmul.f32 %v3955_v53, %v4125_v14 }
 0x11c   : >> { %v2774_v38 = vpop.eup %2773  ;;  %2476 = vmatprep.subr.bf16.mxu0 %v2475_v58  ;;  %v589_v29 = vmul.f32 %v3975_v22, %v4133_v54  ;;  %v753_v1 = vmul.f32 %v3959_v4, %v4125_v14  ;;  %v979_v37 = vmul.f32 %v3964_v59, %v4168_v32  ;;  %v755_v11 = vmul.f32 %v3953_v51, %v4903_v12 }
 0x11d   : >> { %1353 = vperm.xlu1 %2744, %v4900_v7   ;;  %v2776_v61 = vpop.eup %2775  ;;  %2508 = vmatprep.subr.bf16.mxu1 %v2507_v43  ;;  %v2481_v63 = vpack.c.bf16 %v2762_v60, %v2774_v38  ;;  %v587_v60 = vmul.f32 %v3973_v21, %v4133_v54  ;;  %v980_v31 = vmul.f32 %v3966_v24, %v4168_v32 }
 0x11e   : >> { %2478 = vmatpush1.bf16.msra.mxu0 %v2477_v26  ;;  %2510 = vmatpush1.bf16.msra.mxu1 %v2509_v6  ;;  %v2513_v9 = vpack.c.bf16 %v2772_v10, %v2776_v61  ;;  %v756_v5 = vmul.f32 %v3955_v53, %v4903_v12  ;;  %v757_v26 = vmul.f32 %v3959_v4, %v4903_v12 }
 0x11f   : >> { %2480 = vmatprep.subr.bf16.mxu0 %v2479_v3  ;;  %2512 = vmatprep.subr.bf16.mxu1 %v2511_v47  ;;  %v815_v7 = vadd.f32 %v751_v42, %v587_v60  ;;  %v981_v8 = vmul.f32 %v3969_v27, %v4168_v32  ;;  %v758_v6 = vmul.f32 %v3961_v20, %v4903_v12  ;;  %v1116_v60 = vpop.permute.xlu0 %1115 }
 0x120   : >> { %v1111_v46 = vpop.permute.xlu1 %1110  ;;  %v590_v3 = vmul.f32 %v3987_v36, %v4133_v54  ;;  %v816_v10 = vadd.f32 %v752_v18, %v588_v17  ;;  %v817_v38 = vadd.f32 %v753_v1, %v589_v29  ;;  %v754_v61 = vmul.f32 %v3961_v20, %v4125_v14 }
 0x121   : >> { %v1183_v15 = vadd.f32 %v1111_v46, %v1039_v57  ;;  %v1184_v19 = vadd.f32 %v1111_v46, %v1040_v30  ;;  %v1185_v41 = vadd.f32 %v1111_v46, %v1041_v39  ;;  %v1186_v44 = vadd.f32 %v1111_v46, %v1042_v2  ;;  %1363 = vperm.xlu1 %2744, %v4901_v56  }
 0x122   : >> { %2482 = vmatpush1.bf16.msra.mxu0 %v2481_v63  ;;  %2514 = vmatpush1.bf16.msra.mxu1 %v2513_v9  ;;  %v2778_v55 = vpop.eup %2777  ;;  %v591_v57 = vmul.f32 %v3973_v21, %v4105_v35  ;;  %v592_v46 = vmul.f32 %v3985_v34, %v4105_v35  ;;  %v593_v30 = vmul.f32 %v3975_v22, %v4105_v35  ;;  %v4905_v63 = vld [vmem:[#allocation87_spill] sm:$0xff] }
 0x123   : >> { %2785 = vtanh.f32 %v1183_v15  ;;  %v2780_v25 = vpop.eup %2779  ;;  %v1043_v39 = vadd.f32 %v979_v37, %v815_v7  ;;  %v1044_v54 = vadd.f32 %v980_v31, %v816_v10  ;;  %v1045_v56 = vadd.f32 %v981_v8, %v817_v38  ;;  %v4906_v31 = vld [vmem:[#allocation89_spill] sm:$0xff]  ;;  %v4909_v38 = vld [vmem:[#allocation103_spill] sm:$0xff] }
 0x124   : >> { %v4205_v13 = vpop.permute.xlu1 %487  ;;  %2787 = vtanh.f32 %v1184_v19  ;;  %v2782_v23 = vpop.eup %2781  ;;  %v984_v14 = vmul.f32 %v3966_v24, %v4190_v16  ;;  %v985_v42 = vmul.f32 %v3969_v27, %v4190_v16  ;;  %v821_v1 = vadd.f32 %v757_v26, %v593_v30 }
 0x125   : >> { %2789 = vtanh.f32 %v1185_v41  ;;  %1759 = vperm.xlu1 %2744, %v4902_v33   ;;  %v2784_v40 = vpop.eup %2783  ;;  %v594_v41 = vmul.f32 %v3987_v36, %v4105_v35  ;;  %v983_v33 = vmul.f32 %v3964_v59, %v4190_v16  ;;  %v819_v35 = vadd.f32 %v755_v11, %v591_v57  ;;  %v4907_v57 = vld [vmem:[#allocation91_spill] sm:$0xff] }
 0x126   : >> { %2791 = vtanh.f32 %v1186_v44  ;;  %v982_v44 = vmul.f32 %v3971_v28, %v4168_v32  ;;  %v1187_v29 = vadd.f32 %v1116_v60, %v1043_v39  ;;  %v986_v32 = vmul.f32 %v3971_v28, %v4190_v16 }
 0x127   : >> { %v818_v37 = vadd.f32 %v754_v61, %v590_v3  ;;  %v1188_v12 = vadd.f32 %v1116_v60, %v1044_v54  ;;  %v1189_v7 = vadd.f32 %v1116_v60, %v1045_v56  ;;  %v763_v39 = vmul.f32 %v3953_v51, %v4909_v38  ;;  %v4290_v56 = vpop.permute.xlu0 %502 }
 0x128   : >> { %2793 = vtanh.f32 %v1187_v29  ;;  %v601_v29 = vmul.f32 %v3975_v22, %v4226_v49 }
 0x129   : >> { %v4212_v45 = vpop.permute.xlu1 %660  ;;  %1769 = vperm.xlu1 %2744, %v4904_v62   ;;  %v822_v62 = vadd.f32 %v758_v6, %v594_v41  ;;  %2795 = vtanh.f32 %v1188_v12  ;;  %v765_v41 = vmul.f32 %v3959_v4, %v4909_v38 }
 0x12a   : >> { %2797 = vtanh.f32 %v1189_v7  ;;  %v759_v30 = vmul.f32 %v3953_v51, %v4212_v45  ;;  %v760_v61 = vmul.f32 %v3955_v53, %v4212_v45  ;;  %v4911_v7 = vld [vmem:[#allocation97_spill] sm:$0xff] }
 0x12d   : >> { %v2786_v58 = vpop.eup %2785  ;;  %1779 = vperm.xlu1 %2744, %v4905_v63   ;;  %v4910_v63 = vld [vmem:[#allocation95_spill] sm:$0xff] }
 0x12e   : >> { %v4243_v43 = vpop.permute.xlu1 %888  ;;  %v2788_v47 = vpop.eup %2787  ;;  %v2485_v19 = vpack.c.bf16 %v2786_v58, %v2778_v55  ;;  %v1049_v58 = vadd.f32 %v985_v42, %v821_v1  ;;  %v762_v42 = vmul.f32 %v3961_v20, %v4212_v45 }
 0x12f   : >> { %v2790_v2 = vpop.eup %2789  ;;  %v2483_v15 = vpack.c.bf16 %v2788_v47, %v2780_v25  ;;  %v820_v25 = vadd.f32 %v756_v5, %v592_v46  ;;  %v1050_v5 = vadd.f32 %v986_v32, %v822_v62  ;;  %v4908_v46 = vld [vmem:[#allocation93_spill] sm:$0xff]  ;;  %v987_v54 = vmul.f32 %v3964_v59, %v4243_v43 }
 0x130   : >> { %v2792_v9 = vpop.eup %2791  ;;  %v2517_v17 = vpack.c.bf16 %v2790_v2, %v2782_v23  ;;  %v1047_v23 = vadd.f32 %v983_v33, %v819_v35  ;;  %v595_v2 = vmul.f32 %v3973_v21, %v4205_v13  ;;  %v761_v33 = vmul.f32 %v3959_v4, %v4212_v45 }
 0x131   : >> { %2484 = vmatprep.subr.bf16.mxu0 %v2483_v15  ;;  %v2515_v55 = vpack.c.bf16 %v2792_v9, %v2784_v40  ;;  %1789 = vperm.xlu1 %2744, %v4906_v31   ;;  %v1046_v40 = vadd.f32 %v982_v44, %v818_v37  ;;  %v1048_v8 = vadd.f32 %v984_v14, %v820_v25 }
 0x132   : >> { %v4262_v18 = vpop.permute.xlu1 %892  ;;  %2486 = vmatpush1.bf16.msra.mxu0 %v2485_v19  ;;  %v2794_v19 = vpop.eup %2793  ;;  %v764_v9 = vmul.f32 %v3955_v53, %v4909_v38  ;;  %v599_v44 = vmul.f32 %v3973_v21, %v4226_v49  ;;  %v596_v14 = vmul.f32 %v3985_v34, %v4205_v13  ;;  %v600_v25 = vmul.f32 %v3985_v34, %v4226_v49 }
 0x133   : >> { %2516 = vmatprep.subr.bf16.mxu1 %v2515_v55  ;;  %v1190_v47 = vadd.f32 %v1116_v60, %v1046_v40  ;;  %v2796_v60 = vpop.eup %2795  ;;  %v823_v55 = vadd.f32 %v759_v30, %v595_v2  ;;  %v597_v32 = vmul.f32 %v3975_v22, %v4205_v13  ;;  %v989_v1 = vmul.f32 %v3969_v27, %v4243_v43 }
 0x134   : >> { %2518 = vmatpush1.bf16.msra.mxu1 %v2517_v17  ;;  %v988_v17 = vmul.f32 %v3966_v24, %v4243_v43  ;;  %v2798_v35 = vpop.eup %2797  ;;  %v598_v45 = vmul.f32 %v3987_v36, %v4205_v13  ;;  %v824_v12 = vadd.f32 %v760_v61, %v596_v14  ;;  %v990_v31 = vmul.f32 %v3971_v28, %v4243_v43 }
 0x135   : >> { %1799 = vperm.xlu1 %2744, %v4907_v57   ;;  %v1051_v62 = vadd.f32 %v987_v54, %v823_v55  ;;  %v828_v43 = vadd.f32 %v764_v9, %v600_v25  ;;  %v829_v2 = vadd.f32 %v765_v41, %v601_v29  ;;  %v4912_v54 = vld [vmem:[#allocation100_spill] sm:$0xff] }
 0x136   : >> { %v826_v57 = vadd.f32 %v762_v42, %v598_v45  ;;  %v1052_v13 = vadd.f32 %v988_v17, %v824_v12 }
 0x137   : >> { %v1121_v11 = vpop.permute.xlu1 %1120 }
 0x138   : >> { %v1191_v16 = vadd.f32 %v1121_v11, %v1047_v23  ;;  %v1192_v26 = vadd.f32 %v1121_v11, %v1048_v8  ;;  %v1193_v3 = vadd.f32 %v1121_v11, %v1049_v58  ;;  %v1194_v10 = vadd.f32 %v1121_v11, %v1050_v5 }
 0x139   : >> { %1809 = vperm.xlu1 %2744, %v4908_v46   ;;  %v766_v23 = vmul.f32 %v3961_v20, %v4909_v38  ;;  %v825_v8 = vadd.f32 %v761_v33, %v597_v32  ;;  %v602_v5 = vmul.f32 %v3987_v36, %v4226_v49  ;;  %v1054_v61 = vadd.f32 %v990_v31, %v826_v57 }
 0x13a   : >> { %2799 = vtanh.f32 %v1191_v16  ;;  %v991_v33 = vmul.f32 %v3964_v59, %v4262_v18  ;;  %v992_v49 = vmul.f32 %v3966_v24, %v4262_v18 }
 0x13b   : >> { %2801 = vtanh.f32 %v1192_v26  ;;  %v4268_v6 = vpop.permute.xlu1 %497 }
 0x13c   : >> { %2803 = vtanh.f32 %v1193_v3  ;;  %v827_v3 = vadd.f32 %v763_v39, %v599_v44  ;;  %v993_v39 = vmul.f32 %v3969_v27, %v4262_v18  ;;  %v830_v44 = vadd.f32 %v766_v23, %v602_v5 }
 0x13d   : >> { %2805 = vtanh.f32 %v1194_v10  ;;  %1819 = vperm.xlu1 %2744, %v4910_v63   ;;  %v1126_v10 = vpop.permute.xlu0 %1125  ;;  %v1056_v17 = vadd.f32 %v992_v49, %v828_v43 }
 0x13e   : >> { %2807 = vtanh.f32 %v1190_v47  ;;  %v1053_v47 = vadd.f32 %v989_v1, %v825_v8  ;;  %v1195_v38 = vadd.f32 %v1126_v10, %v1051_v62  ;;  %v1196_v41 = vadd.f32 %v1126_v10, %v1052_v13  ;;  %v4913_v13 = vld [vmem:[#allocation104_spill] sm:$0xff] }
 0x13f   : >> { %v1198_v42 = vadd.f32 %v1126_v10, %v1054_v61  ;;  %v1055_v55 = vadd.f32 %v991_v33, %v827_v3  ;;  %v603_v8 = vmul.f32 %v3973_v21, %v4268_v6  ;;  %v604_v3 = vmul.f32 %v3985_v34, %v4268_v6 }
 0x140   : >> { %v4282_v15 = vpop.permute.xlu1 %668  ;;  %v1197_v14 = vadd.f32 %v1126_v10, %v1053_v47  ;;  %2809 = vtanh.f32 %v1195_v38 }
 0x141   : >> { %1829 = vperm.xlu1 %2744, %v4911_v7   ;;  %2811 = vtanh.f32 %v1196_v41  ;;  %v767_v31 = vmul.f32 %v3953_v51, %v4282_v15  ;;  %v770_v43 = vmul.f32 %v3961_v20, %v4282_v15 }
 0x142   : >> { %2813 = vtanh.f32 %v1197_v14 }
 0x143   : >> { %2815 = vtanh.f32 %v1198_v42  ;;  %v607_v42 = vmul.f32 %v3973_v21, %v4290_v56 }
 0x144   : >> { %v2800_v37 = vpop.eup %2799 }
 0x145   : >> { %v2802_v40 = vpop.eup %2801  ;;  %v4315_v58 = vpop.permute.xlu1 %896  ;;  %v2489_v16 = vpack.c.bf16 %v2800_v37, %v2794_v19  ;;  %2225 = vperm.xlu1 %2744, %v4912_v54   ;;  %v606_v54 = vmul.f32 %v3987_v36, %v4268_v6 }
 0x146   : >> { %v2804_v11 = vpop.eup %2803  ;;  %v2487_v46 = vpack.c.bf16 %v2802_v40, %v2796_v60  ;;  %v994_v60 = vmul.f32 %v3971_v28, %v4262_v18  ;;  %v768_v40 = vmul.f32 %v3955_v53, %v4282_v15  ;;  %v995_v5 = vmul.f32 %v3964_v59, %v4315_v58 }
 0x147   : >> { %v2806_v26 = vpop.eup %2805  ;;  %v2521_v63 = vpack.c.bf16 %v2804_v11, %v2798_v35  ;;  %v1057_v35 = vadd.f32 %v993_v39, %v829_v2  ;;  %v769_v11 = vmul.f32 %v3959_v4, %v4282_v15  ;;  %v996_v10 = vmul.f32 %v3966_v24, %v4315_v58 }
 0x148   : >> { %v2808_v30 = vpop.eup %2807  ;;  %2488 = vmatprep.subr.bf16.mxu0 %v2487_v46  ;;  %v1058_v29 = vadd.f32 %v994_v60, %v830_v44  ;;  %v772_v46 = vmul.f32 %v3955_v53, %v4913_v13  ;;  %v831_v2 = vadd.f32 %v767_v31, %v603_v8  ;;  %v997_v61 = vmul.f32 %v3969_v27, %v4315_v58 }
 0x149   : >> { %v2519_v19 = vpack.c.bf16 %v2806_v26, %v2808_v30  ;;  %v4326_v9 = vpop.permute.xlu1 %900  ;;  %2490 = vmatpush1.bf16.msra.mxu0 %v2489_v16  ;;  %v771_v16 = vmul.f32 %v3953_v51, %v4913_v13  ;;  %v4346_v26 = vpop.permute.xlu0 %512  ;;  %v605_v30 = vmul.f32 %v3975_v22, %v4268_v6  ;;  %v998_v15 = vmul.f32 %v3971_v28, %v4315_v58 }
 0x14a   : >> { %v2810_v12 = vpop.eup %2809  ;;  %v773_v39 = vmul.f32 %v3959_v4, %v4913_v13  ;;  %v1059_v44 = vadd.f32 %v995_v5, %v831_v2  ;;  %v608_v6 = vmul.f32 %v3985_v34, %v4290_v56  ;;  %v609_v58 = vmul.f32 %v3975_v22, %v4290_v56 }
 0x14b   : >> { %2520 = vmatprep.subr.bf16.mxu1 %v2519_v19  ;;  %v2812_v7 = vpop.eup %2811  ;;  %v833_v19 = vadd.f32 %v769_v11, %v605_v30  ;;  %v999_v31 = vmul.f32 %v3964_v59, %v4326_v9  ;;  %v835_v11 = vadd.f32 %v771_v16, %v607_v42 }
 0x14c   : >> { %2522 = vmatpush1.bf16.msra.mxu1 %v2521_v63  ;;  %v2814_v23 = vpop.eup %2813  ;;  %v832_v63 = vadd.f32 %v768_v40, %v604_v3  ;;  %v1001_v40 = vmul.f32 %v3969_v27, %v4326_v9  ;;  %v836_v5 = vadd.f32 %v772_v46, %v608_v6 }
 0x14d   : >> { %v2816_v57 = vpop.eup %2815 }
 0x14e   : >> { %v1131_v25 = vpop.permute.xlu1 %1130 }
 0x14f   : >> { %v1199_v32 = vadd.f32 %v1131_v25, %v1055_v55  ;;  %v1200_v1 = vadd.f32 %v1131_v25, %v1056_v17  ;;  %v1201_v37 = vadd.f32 %v1131_v25, %v1057_v35  ;;  %v1202_v45 = vadd.f32 %v1131_v25, %v1058_v29 }
 0x150   : >> { %v834_v55 = vadd.f32 %v770_v43, %v606_v54  ;;  %v1060_v17 = vadd.f32 %v996_v10, %v832_v63  ;;  %v1061_v35 = vadd.f32 %v997_v61, %v833_v19  ;;  %v1063_v10 = vadd.f32 %v999_v31, %v835_v11 }
 0x151   : >> { %2817 = vtanh.f32 %v1199_v32  ;;  %v774_v32 = vmul.f32 %v3961_v20, %v4913_v13 }
 0x152   : >> { %2819 = vtanh.f32 %v1200_v1  ;;  %v4330_v18 = vpop.permute.xlu1 %507  ;;  %v610_v1 = vmul.f32 %v3987_v36, %v4290_v56  ;;  %v1002_v56 = vmul.f32 %v3971_v28, %v4326_v9 }
 0x153   : >> { %2821 = vtanh.f32 %v1201_v37  ;;  %v1136_v37 = vpop.permute.xlu0 %1135  ;;  %v612_v6 = vmul.f32 %v3985_v34, %v4330_v18 }
 0x154   : >> { %2823 = vtanh.f32 %v1202_v45  ;;  %v1062_v45 = vadd.f32 %v998_v15, %v834_v55  ;;  %v1204_v8 = vadd.f32 %v1136_v37, %v1060_v17  ;;  %v1205_v13 = vadd.f32 %v1136_v37, %v1061_v35  ;;  %v4914_v15 = vld [vmem:[#allocation105_spill] sm:$0xff] }
 0x155   : >> { %v838_v3 = vadd.f32 %v774_v32, %v610_v1  ;;  %v782_v19 = vmul.f32 %v3961_v20, %v4914_v15  ;;  %v613_v32 = vmul.f32 %v3975_v22, %v4330_v18 }
 0x156   : >> { %v1206_v43 = vadd.f32 %v1136_v37, %v1062_v45  ;;  %v617_v45 = vmul.f32 %v3975_v22, %v4346_v26 }
 0x157   : >> { %v4334_v62 = vpop.permute.xlu1 %676  ;;  %v1066_v61 = vadd.f32 %v1002_v56, %v838_v3  ;;  %v523_v42 = vpop.permute.xlu0 %522  ;;  %v618_v56 = vmul.f32 %v3987_v36, %v4346_v26 }
 0x158   : >> { %v775_v16 = vmul.f32 %v3953_v51, %v4334_v62  ;;  %v777_v55 = vmul.f32 %v3959_v4, %v4334_v62  ;;  %v778_v35 = vmul.f32 %v3961_v20, %v4334_v62 }
 0x15a   : >> { %v841_v11 = vadd.f32 %v777_v55, %v613_v32 }
 0x15b   : >> { %v2818_v47 = vpop.eup %2817 }
 0x15c   : >> { %v2820_v38 = vpop.eup %2819  ;;  %v2493_v33 = vpack.c.bf16 %v2818_v47, %v2810_v12  ;;  %v4366_v41 = vpop.permute.xlu1 %904  ;;  %v1203_v12 = vadd.f32 %v1136_v37, %v1059_v44  ;;  %v611_v44 = vmul.f32 %v3973_v21, %v4330_v18 }
 0x15d   : >> { %v2822_v49 = vpop.eup %2821  ;;  %v2491_v60 = vpack.c.bf16 %v2820_v38, %v2812_v7  ;;  %v1000_v7 = vmul.f32 %v3966_v24, %v4326_v9  ;;  %v779_v9 = vmul.f32 %v3953_v51, %v4914_v15  ;;  %v1004_v17 = vmul.f32 %v3966_v24, %v4366_v41 }
 0x15e   : >> { %v2824_v14 = vpop.eup %2823  ;;  %v2525_v29 = vpack.c.bf16 %v2822_v49, %v2814_v23  ;;  %2825 = vtanh.f32 %v1203_v12  ;;  %v781_v49 = vmul.f32 %v3959_v4, %v4914_v15  ;;  %v1005_v37 = vmul.f32 %v3969_v27, %v4366_v41 }
 0x15f   : >> { %2492 = vmatprep.subr.bf16.mxu0 %v2491_v60  ;;  %v2523_v25 = vpack.c.bf16 %v2824_v14, %v2816_v57  ;;  %v837_v57 = vadd.f32 %v773_v39, %v609_v58  ;;  %v1064_v47 = vadd.f32 %v1000_v7, %v836_v5  ;;  %2827 = vtanh.f32 %v1204_v8 }
 0x160   : >> { %2494 = vmatpush1.bf16.msra.mxu0 %v2493_v33  ;;  %v4384_v23 = vpop.permute.xlu1 %908  ;;  %2829 = vtanh.f32 %v1205_v13  ;;  %v780_v33 = vmul.f32 %v3955_v53, %v4914_v15  ;;  %v776_v39 = vmul.f32 %v3955_v53, %v4334_v62  ;;  %v1003_v60 = vmul.f32 %v3964_v59, %v4366_v41 }
 0x161   : >> { %2524 = vmatprep.subr.bf16.mxu1 %v2523_v25  ;;  %v1065_v30 = vadd.f32 %v1001_v40, %v837_v57  ;;  %2831 = vtanh.f32 %v1206_v43  ;;  %v615_v58 = vmul.f32 %v3973_v21, %v4346_v26  ;;  %v839_v25 = vadd.f32 %v775_v16, %v611_v44  ;;  %v4915_v40 = vld [vmem:[#allocation106_spill] sm:$0xff] }
 0x162   : >> { %2526 = vmatpush1.bf16.msra.mxu1 %v2525_v29  ;;  %v616_v29 = vmul.f32 %v3985_v34, %v4346_v26  ;;  %v840_v1 = vadd.f32 %v776_v39, %v612_v6  ;;  %v614_v12 = vmul.f32 %v3987_v36, %v4330_v18  ;;  %v1006_v62 = vmul.f32 %v3971_v28, %v4366_v41 }
 0x163   : >> { %v1067_v31 = vadd.f32 %v1003_v60, %v839_v25  ;;  %v787_v8 = vmul.f32 %v3953_v51, %v4915_v40  ;;  %v788_v3 = vmul.f32 %v3955_v53, %v4915_v40  ;;  %v789_v18 = vmul.f32 %v3959_v4, %v4915_v40 }
 0x164   : >> { %v1068_v5 = vadd.f32 %v1004_v17, %v840_v1  ;;  %v790_v41 = vmul.f32 %v3961_v20, %v4915_v40  ;;  %v842_v43 = vadd.f32 %v778_v35, %v614_v12  ;;  %v624_v26 = vmul.f32 %v3985_v34, %v523_v42 }
 0x165   : >> { %v1141_v2 = vpop.permute.xlu1 %1140  ;;  %v846_v39 = vadd.f32 %v782_v19, %v618_v56  ;;  %v625_v44 = vmul.f32 %v3975_v22, %v523_v42  ;;  %v626_v60 = vmul.f32 %v3987_v36, %v523_v42  ;;  %v1008_v17 = vmul.f32 %v3966_v24, %v4384_v23 }
 0x166   : >> { %v1207_v38 = vadd.f32 %v1141_v2, %v1063_v10  ;;  %v1208_v54 = vadd.f32 %v1141_v2, %v1064_v47  ;;  %v1209_v63 = vadd.f32 %v1141_v2, %v1065_v30  ;;  %v1210_v46 = vadd.f32 %v1141_v2, %v1066_v61  ;;  %v1146_v2 = vpop.permute.xlu0 %1145 }
 0x167   : >> { %v843_v47 = vadd.f32 %v779_v9, %v615_v58  ;;  %v623_v30 = vmul.f32 %v3973_v21, %v523_v42  ;;  %v1069_v61 = vadd.f32 %v1005_v37, %v841_v11  ;;  %v1070_v15 = vadd.f32 %v1006_v62, %v842_v43 }
 0x168   : >> { %2833 = vtanh.f32 %v1207_v38  ;;  %v2826_v7 = vpop.eup %2825  ;;  %v1211_v16 = vadd.f32 %v1146_v2, %v1067_v31  ;;  %v1212_v6 = vadd.f32 %v1146_v2, %v1068_v5  ;;  %v1007_v9 = vmul.f32 %v3964_v59, %v4384_v23 }
 0x169   : >> { %2835 = vtanh.f32 %v1208_v54  ;;  %v4404_v14 = vpop.permute.xlu1 %517  ;;  %v2828_v13 = vpop.eup %2827  ;;  %v844_v54 = vadd.f32 %v780_v33, %v616_v29  ;;  %v1009_v33 = vmul.f32 %v3969_v27, %v4384_v23  ;;  %v851_v35 = vadd.f32 %v787_v8, %v623_v30 }
 0x16a   : >> { %2837 = vtanh.f32 %v1209_v63  ;;  %v2830_v10 = vpop.eup %2829  ;;  %v845_v63 = vadd.f32 %v781_v49, %v617_v45  ;;  %v1010_v49 = vmul.f32 %v3971_v28, %v4384_v23  ;;  %v852_v25 = vadd.f32 %v788_v3, %v624_v26  ;;  %v1161_v26 = vpop.permute.xlu0 %1160 }
 0x16b   : >> { %2839 = vtanh.f32 %v1210_v46  ;;  %v2832_v38 = vpop.eup %2831  ;;  %v1213_v29 = vadd.f32 %v1146_v2, %v1069_v61  ;;  %v1214_v1 = vadd.f32 %v1146_v2, %v1070_v15  ;;  %v853_v12 = vadd.f32 %v789_v18, %v625_v44 }
 0x16c   : >> { %2841 = vtanh.f32 %v1211_v16  ;;  %v854_v62 = vadd.f32 %v790_v41, %v626_v60  ;;  %v1071_v56 = vadd.f32 %v1007_v9, %v843_v47  ;;  %v1072_v11 = vadd.f32 %v1008_v17, %v844_v54 }
 0x16d   : >> { %2843 = vtanh.f32 %v1212_v6  ;;  %v1073_v23 = vadd.f32 %v1009_v33, %v845_v63  ;;  %v1074_v5 = vadd.f32 %v1010_v49, %v846_v39  ;;  %v619_v3 = vmul.f32 %v3973_v21, %v4404_v14 }
 0x16e   : >> { %v4432_v57 = vpop.permute.xlu1 %684  ;;  %2845 = vtanh.f32 %v1213_v29  ;;  %v620_v18 = vmul.f32 %v3985_v34, %v4404_v14  ;;  %v621_v2 = vmul.f32 %v3975_v22, %v4404_v14  ;;  %v622_v16 = vmul.f32 %v3987_v36, %v4404_v14 }
 0x16f   : >> { %2847 = vtanh.f32 %v1214_v1  ;;  %v783_v43 = vmul.f32 %v3953_v51, %v4432_v57  ;;  %v784_v61 = vmul.f32 %v3955_v53, %v4432_v57  ;;  %v785_v21 = vmul.f32 %v3959_v4, %v4432_v57 }
 0x171   : >> { %v847_v53 = vadd.f32 %v783_v43, %v619_v3  ;;  %v849_v17 = vadd.f32 %v785_v21, %v621_v2  ;;  %v4920_v2 = vld [vmem:[#allocation42_spill] sm:$0xff]  ;;  %v4922_v21 = vld [vmem:[#allocation44_spill] sm:$0xff] }
 0x172   : >> { %v2834_v46 = vpop.eup %2833 }
 0x173   : >> { %v2836_v55 = vpop.eup %2835  ;;  %v913_v58 = vpop.permute.xlu1 %912  ;;  %v2497_v42 = vpack.c.bf16 %v2834_v46, %v2826_v7  ;;  %v786_v46 = vmul.f32 %v3961_v20, %v4432_v57 }
 0x174   : >> { %v2838_v19 = vpop.eup %2837  ;;  %v2495_v37 = vpack.c.bf16 %v2836_v55, %v2828_v13  ;;  %v1012_v22 = vmul.f32 %v3966_v24, %v913_v58  ;;  %v1013_v44 = vmul.f32 %v3969_v27, %v913_v58  ;;  %v1014_v6 = vmul.f32 %v3971_v28, %v913_v58 }
 0x175   : >> { %v2840_v32 = vpop.eup %2839  ;;  %v2529_v45 = vpack.c.bf16 %v2838_v19, %v2830_v10  ;;  %v850_v57 = vadd.f32 %v786_v46, %v622_v16  ;;  %v4929_v16 = vld [vmem:[#allocation51_spill] sm:$0xff]  ;;  %v4930_v46 = vld [vmem:[#allocation52_spill] sm:$0xff] }
 0x176   : >> { %v2527_v31 = vpack.c.bf16 %v2840_v32, %v2832_v38  ;;  %2496 = vmatprep.subr.bf16.mxu0 %v2495_v37  ;;  %v1011_v38 = vmul.f32 %v3964_v59, %v913_v58  ;;  %v2842_v60 = vpop.eup %2841 }
 0x177   : >> { %v917_v40 = vpop.permute.xlu1 %916  ;;  %2498 = vmatpush1.bf16.msra.mxu0 %v2497_v42  ;;  %v2844_v9 = vpop.eup %2843 }
 0x178   : >> { %2528 = vmatprep.subr.bf16.mxu1 %v2527_v31  ;;  %v1015_v7 = vmul.f32 %v3964_v59, %v917_v40  ;;  %v1016_v8 = vmul.f32 %v3966_v24, %v917_v40  ;;  %v1017_v13 = vmul.f32 %v3969_v27, %v917_v40  ;;  %v1018_v41 = vmul.f32 %v3971_v28, %v917_v40  ;;  %v2846_v49 = vpop.eup %2845 }
 0x179   : >> { %2530 = vmatpush1.bf16.msra.mxu1 %v2529_v45  ;;  %v848_v59 = vadd.f32 %v784_v61, %v620_v18  ;;  %v1075_v20 = vadd.f32 %v1011_v38, %v847_v53  ;;  %v1077_v27 = vadd.f32 %v1013_v44, %v849_v17  ;;  %v4921_v61 = vld [vmem:[#allocation43_spill] sm:$0xff]  ;;  %v4924_v38 = vld [vmem:[#allocation46_spill] sm:$0xff] }
 0x17a   : >> { %v1079_v10 = vadd.f32 %v1015_v7, %v851_v35  ;;  %v1080_v47 = vadd.f32 %v1016_v8, %v852_v25  ;;  %v1081_v30 = vadd.f32 %v1017_v13, %v853_v12  ;;  %v1082_v34 = vadd.f32 %v1018_v41, %v854_v62  ;;  %v2848_v35 = vpop.eup %2847 }
 0x17b   : >> { %v1076_v33 = vadd.f32 %v1012_v22, %v848_v59  ;;  %v1078_v25 = vadd.f32 %v1014_v6, %v850_v57  ;;  %v4931_v22 = vld [vmem:[#allocation53_spill] sm:$0xff] }
 0x17c   : >> { %v1223_v54 = vadd.f32 %v1161_v26, %v1079_v10  ;;  %v1224_v63 = vadd.f32 %v1161_v26, %v1080_v47  ;;  %v1225_v15 = vadd.f32 %v1161_v26, %v1081_v30  ;;  %v1151_v51 = vpop.permute.xlu1 %1150  ;;  %v1226_v39 = vadd.f32 %v1161_v26, %v1082_v34  ;;  %v4916_v10 = vld [vmem:[#allocation38_spill] sm:$0xff]  ;;  %v4917_v47 = vld [vmem:[#allocation39_spill] sm:$0xff]  ;;  %v4918_v30 = vld [vmem:[#allocation40_spill] sm:$0xff] }
 0x17d   : >> { %v1215_v4 = vadd.f32 %v1151_v51, %v1071_v56  ;;  %v1216_v55 = vadd.f32 %v1151_v51, %v1072_v11  ;;  %v1217_v36 = vadd.f32 %v1151_v51, %v1073_v23  ;;  %v1218_v24 = vadd.f32 %v1151_v51, %v1074_v5  ;;  %v4919_v26 = vld [vmem:[#allocation41_spill] sm:$0xff]  ;;  %v4928_v51 = vld [vmem:[#allocation50_spill] sm:$0xff] }
 0x17e   : >> { %2849 = vtanh.f32 %v1223_v54  ;;  %v4923_v34 = vld [vmem:[#allocation45_spill] sm:$0xff]  ;;  %v4925_v54 = vld [vmem:[#allocation47_spill] sm:$0xff] }
 0x17f   : >> { %2851 = vtanh.f32 %v1224_v63  ;;  %v4926_v63 = vld [vmem:[#allocation48_spill] sm:$0xff] }
 0x180   : >> { %2853 = vtanh.f32 %v1225_v15  ;;  %v1156_v14 = vpop.permute.xlu1 %1155  ;;  %v4927_v15 = vld [vmem:[#allocation49_spill] sm:$0xff] }
 0x181   : >> { %2855 = vtanh.f32 %v1226_v39  ;;  %v1219_v19 = vadd.f32 %v1156_v14, %v1075_v20  ;;  %v1220_v28 = vadd.f32 %v1156_v14, %v1076_v33  ;;  %v1221_v58 = vadd.f32 %v1156_v14, %v1077_v27 }
 0x182   : >> { %2857 = vtanh.f32 %v1215_v4  ;;  %v1222_v29 = vadd.f32 %v1156_v14, %v1078_v25 }
 0x183   : >> { %2859 = vtanh.f32 %v1216_v55 }
 0x184   : >> { %2861 = vtanh.f32 %v1217_v36  ;;  %v1294_v39 = vpop.permute.xlu1 %1293 }
 0x185   : >> { %2863 = vtanh.f32 %v1218_v24 }
 0x186   : >> { %2865 = vtanh.f32 %v1219_v19 }
 0x187   : >> { %2867 = vtanh.f32 %v1220_v28 }
 0x188   : >> { %v2850_v42 = vpop.eup %2849  ;;  %2869 = vtanh.f32 %v1221_v58  ;;  %v1304_v27 = vpop.permute.xlu1 %1303 }
 0x189   : >> { %v2852_v32 = vpop.eup %2851  ;;  %2871 = vtanh.f32 %v1222_v29 }
 0x18a   : >> { %v2854_v1 = vpop.eup %2853 }
 0x18b   : >> { %v2856_v37 = vpop.eup %2855 }
 0x18c   : >> { %v2858_v45 = vpop.eup %2857 }
 0x18d   : >> { %v2860_v12 = vpop.eup %2859  ;;  %v2501_v62 = vpack.c.bf16 %v2858_v45, %v2842_v60 }
 0x18e   : >> { %v2862_v31 = vpop.eup %2861  ;;  %v2499_v40 = vpack.c.bf16 %v2860_v12, %v2844_v9  ;;  %v1299_v9 = vpop.permute.xlu0 %1298 }
 0x18f   : >> { %v2864_v56 = vpop.eup %2863  ;;  %v2533_v11 = vpack.c.bf16 %v2862_v31, %v2846_v49 }
 0x190   : >> { %v2866_v23 = vpop.eup %2865  ;;  %2500 = vmatprep.subr.bf16.mxu0 %v2499_v40  ;;  %v2531_v5 = vpack.c.bf16 %v2864_v56, %v2848_v35 }
 0x191   : >> { %v2868_v7 = vpop.eup %2867  ;;  %2502 = vmatpush1.bf16.msra.mxu0 %v2501_v62  ;;  %v2505_v8 = vpack.c.bf16 %v2850_v42, %v2866_v23 }
 0x192   : >> { %v2870_v13 = vpop.eup %2869  ;;  %2532 = vmatprep.subr.bf16.mxu1 %v2531_v5  ;;  %v2503_v3 = vpack.c.bf16 %v2852_v32, %v2868_v7 }
 0x193   : >> { %v2872_v18 = vpop.eup %2871  ;;  %2534 = vmatpush1.bf16.msra.mxu1 %v2533_v11  ;;  %v2537_v41 = vpack.c.bf16 %v2854_v1, %v2870_v13  ;;  %v1309_v1 = vpop.permute.xlu0 %1308 }
 0x194   : >> { %2504 = vmatprep.subr.bf16.mxu0 %v2503_v3  ;;  %v2535_v43 = vpack.c.bf16 %v2856_v37, %v2872_v18  ;;  %v1314_v13 = vpop.permute.xlu1 %1313 }
 0x195   : >> { %2506 = vmatpush1.bf16.msra.mxu0 %v2505_v8 }
 0x196   : >> { %2536 = vmatprep.subr.bf16.mxu1 %v2535_v43 }
 0x197   : >> { %2538 = vmatpush1.bf16.msra.mxu1 %v2537_v41 }
 0x198   : >> { %1436 = vmatmul.mubr.f32.vlgmr.msra.gmra.mrb[0].mxu0 %v4916_v10 }
 0x199   : >> { %1441 = vmatprep.mubr.f32.mxu0 %v3204_v0 }
 0x19a   : >> { %1597 = vmatmul.mubr.f32.vlgmr.msra.gmra.mrb[0].mxu1 %v4916_v10 }
 0x19b   : >> { %1602 = vmatprep.mubr.f32.mxu1 %v3204_v0 }
 0x19c   : >> { %1442 = vmatmul.mubr.f32.gmra.mrb[2].mxu0 %v4917_v47 }
 0x19d   : >> { %1447 = vmatprep.mubr.f32.mxu0 %v3204_v0 }
 0x19e   : >> { %1603 = vmatmul.mubr.f32.gmra.mrb[2].mxu1 %v4917_v47 }
 0x19f   : >> { %1608 = vmatprep.mubr.f32.mxu1 %v3204_v0 }
 0x1a0   : >> { %1448 = vmatmul.mubr.f32.gmra.mrb[4].mxu0 %v4918_v30 }
 0x1a1   : >> { %1453 = vmatprep.mubr.f32.mxu0 %v3204_v0 }
 0x1a2   : >> { %1609 = vmatmul.mubr.f32.gmra.mrb[4].mxu1 %v4918_v30 }
 0x1a3   : >> { %1614 = vmatprep.mubr.f32.mxu1 %v3204_v0 }
 0x1a4   : >> { %1454 = vmatmul.mubr.f32.gmra.mrb[6].mxu0 %v4919_v26 }
 0x1a5   : >> { %1459 = vmatprep.mubr.f32.mxu0 %v3204_v0 }
 0x1a6   : >> { %1615 = vmatmul.mubr.f32.gmra.mrb[6].mxu1 %v4919_v26 }
 0x1a7   : >> { %1620 = vmatprep.mubr.f32.mxu1 %v3204_v0 }
 0x1a8   : >> { %1460 = vmatmul.mubr.f32.gmra.mrb[8].mxu0 %v4920_v2 }
 0x1a9   : >> { %1465 = vmatprep.mubr.f32.mxu0 %v3204_v0 }
 0x1aa   : >> { %1621 = vmatmul.mubr.f32.gmra.mrb[8].mxu1 %v4920_v2 }
 0x1ab   : >> { %1626 = vmatprep.mubr.f32.mxu1 %v3204_v0 }
 0x1ac   : >> { %1466 = vmatmul.mubr.f32.gmra.mrb[10].mxu0 %v4921_v61 }
 0x1ad   : >> { %1471 = vmatprep.mubr.f32.mxu0 %v3204_v0 }
 0x1ae   : >> { %1627 = vmatmul.mubr.f32.gmra.mrb[10].mxu1 %v4921_v61 }
 0x1af   : >> { %1632 = vmatprep.mubr.f32.mxu1 %v3204_v0 }
 0x1b0   : >> { %1472 = vmatmul.mubr.f32.gmra.mrb[12].mxu0 %v4922_v21 }
 0x1b1   : >> { %1477 = vmatprep.mubr.f32.mxu0 %v3204_v0 }
 0x1b2   : >> { %1633 = vmatmul.mubr.f32.gmra.mrb[12].mxu1 %v4922_v21 }
 0x1b3   : >> { %1638 = vmatprep.mubr.f32.mxu1 %v3204_v0 }
 0x1b4   : >> { %1478 = vmatmul.mubr.f32.gmra.mrb[14].mxu0 %v4923_v34 }
 0x1b5   : >> { %1483 = vmatprep.mubr.f32.mxu0 %v3204_v0 }
 0x1b6   : >> { %1639 = vmatmul.mubr.f32.gmra.mrb[14].mxu1 %v4923_v34 }
 0x1b7   : >> { %1644 = vmatprep.mubr.f32.mxu1 %v3204_v0 }
 0x1b8   : >> { %1484 = vmatmul.mubr.f32.gmra.mrb[16].mxu0 %v4924_v38 }
 0x1b9   : >> { %1489 = vmatprep.mubr.f32.mxu0 %v3204_v0 }
 0x1ba   : >> { %1645 = vmatmul.mubr.f32.gmra.mrb[16].mxu1 %v4924_v38 }
 0x1bb   : >> { %1650 = vmatprep.mubr.f32.mxu1 %v3204_v0 }
 0x1bc   : >> { %1490 = vmatmul.mubr.f32.gmra.mrb[18].mxu0 %v4925_v54 }
 0x1bd   : >> { %1495 = vmatprep.mubr.f32.mxu0 %v3204_v0 }
 0x1be   : >> { %1651 = vmatmul.mubr.f32.gmra.mrb[18].mxu1 %v4925_v54 }
 0x1bf   : >> { %1656 = vmatprep.mubr.f32.mxu1 %v3204_v0 }
 0x1c0   : >> { %1496 = vmatmul.mubr.f32.gmra.mrb[20].mxu0 %v4926_v63 }
 0x1c1   : >> { %1501 = vmatprep.mubr.f32.mxu0 %v3204_v0 }
 0x1c2   : >> { %1657 = vmatmul.mubr.f32.gmra.mrb[20].mxu1 %v4926_v63 }
 0x1c3   : >> { %1662 = vmatprep.mubr.f32.mxu1 %v3204_v0 }
 0x1c4   : >> { %1502 = vmatmul.mubr.f32.gmra.mrb[22].mxu0 %v4927_v15 }
 0x1c5   : >> { %1507 = vmatprep.mubr.f32.mxu0 %v3204_v0 }
 0x1c6   : >> { %1663 = vmatmul.mubr.f32.gmra.mrb[22].mxu1 %v4927_v15 }
 0x1c7   : >> { %1668 = vmatprep.mubr.f32.mxu1 %v3204_v0 }
 0x1c8   : >> { %1508 = vmatmul.mubr.f32.gmra.mrb[24].mxu0 %v4928_v51 }
 0x1c9   : >> { %1513 = vmatprep.mubr.f32.mxu0 %v3204_v0 }
 0x1ca   : >> { %1669 = vmatmul.mubr.f32.gmra.mrb[24].mxu1 %v4928_v51 }
 0x1cb   : >> { %1674 = vmatprep.mubr.f32.mxu1 %v3204_v0 }
 0x1cc   : >> { %1514 = vmatmul.mubr.f32.gmra.mrb[26].mxu0 %v4929_v16 }
 0x1cd   : >> { %1519 = vmatprep.mubr.f32.mxu0 %v3204_v0 }
 0x1ce   : >> { %1675 = vmatmul.mubr.f32.gmra.mrb[26].mxu1 %v4929_v16 }
 0x1cf   : >> { %1680 = vmatprep.mubr.f32.mxu1 %v3204_v0 }
 0x1d0   : >> { %1520 = vmatmul.mubr.f32.gmra.mrb[28].mxu0 %v4930_v46 }
 0x1d1   : >> { %1525 = vmatprep.mubr.f32.mxu0 %v3204_v0 }
 0x1d2   : >> { %1681 = vmatmul.mubr.f32.gmra.mrb[28].mxu1 %v4930_v46 }
 0x1d3   : >> { %1686 = vmatprep.mubr.f32.mxu1 %v3204_v0 }
 0x1d4   : >> { %1526 = vmatmul.mubr.f32.gmra.mrb[30].mxu0 %v4931_v22 }
 0x1d5   : >> { %1901 = vmatprep.mubr.f32.mxu0 %v3204_v0 }
 0x1d6   : >> { %1687 = vmatmul.mubr.f32.gmra.mrb[30].mxu1 %v4931_v22 }
 0x1d7   : >> { %2062 = vmatprep.mubr.f32.mxu1 %v3204_v0 }
 0x26b   : >> { %v1437_v53 = vpop.f32.mrb[0].mxu0 }
 0x26c   : >> { %v1438_v44 = vadd.f32 %v1437_v53, %v1294_v39  ;;  %v1439_v4 = vpop.f32.mrb[1].mxu0 }
 0x26d   : >> { %v1598_v60 = vpop.f32.mrb[0].mxu1  ;;  %v1440_v59 = vadd.f32 %v1439_v4, %v1294_v39 }
 0x26e   : >> { %2873 = vtanh.f32 %v1438_v44  ;;  %v1599_v6 = vadd.f32 %v1598_v60, %v1294_v39  ;;  %v1600_v55 = vpop.f32.mrb[1].mxu1 }
 0x26f   : >> { %2875 = vtanh.f32 %v1440_v59  ;;  %v1601_v17 = vadd.f32 %v1600_v55, %v1294_v39  ;;  %v1443_v36 = vpop.f32.mrb[2].mxu0 }
 0x270   : >> { %2877 = vtanh.f32 %v1599_v6  ;;  %v1444_v14 = vadd.f32 %v1443_v36, %v1299_v9  ;;  %v1445_v20 = vpop.f32.mrb[3].mxu0  ;;  %v1319_v36 = vpop.permute.xlu0 %1318 }
 0x271   : >> { %2879 = vtanh.f32 %v1601_v17  ;;  %v1604_v57 = vpop.f32.mrb[2].mxu1  ;;  %v1446_v24 = vadd.f32 %v1445_v20, %v1299_v9 }
 0x272   : >> { %2881 = vtanh.f32 %v1444_v14  ;;  %v1605_v33 = vadd.f32 %v1604_v57, %v1299_v9  ;;  %v1606_v49 = vpop.f32.mrb[3].mxu1 }
 0x273   : >> { %2883 = vtanh.f32 %v1446_v24  ;;  %v1607_v19 = vadd.f32 %v1606_v49, %v1299_v9  ;;  %v1449_v35 = vpop.f32.mrb[4].mxu0 }
 0x274   : >> { %2885 = vtanh.f32 %v1605_v33  ;;  %v1450_v25 = vadd.f32 %v1449_v35, %v1304_v27  ;;  %v1451_v28 = vpop.f32.mrb[5].mxu0 }
 0x275   : >> { %2887 = vtanh.f32 %v1607_v19  ;;  %v1610_v58 = vpop.f32.mrb[4].mxu1  ;;  %v1452_v29 = vadd.f32 %v1451_v28, %v1304_v27 }
 0x276   : >> { %2889 = vtanh.f32 %v1450_v25  ;;  %v1611_v42 = vadd.f32 %v1610_v58, %v1304_v27  ;;  %v1612_v32 = vpop.f32.mrb[5].mxu1 }
 0x277   : >> { %2891 = vtanh.f32 %v1452_v29  ;;  %v1613_v37 = vadd.f32 %v1612_v32, %v1304_v27  ;;  %v1455_v45 = vpop.f32.mrb[6].mxu0  ;;  %v1324_v32 = vpop.permute.xlu1 %1323 }
 0x278   : >> { %v2874_v12 = vpop.eup %2873  ;;  %2893 = vtanh.f32 %v1611_v42  ;;  %v1456_v62 = vadd.f32 %v1455_v45, %v1309_v1  ;;  %v1457_v31 = vpop.f32.mrb[7].mxu0 }
 0x279   : >> { %v2876_v40 = vpop.eup %2875  ;;  %2895 = vtanh.f32 %v1613_v37  ;;  %v1616_v56 = vpop.f32.mrb[6].mxu1  ;;  %v1458_v11 = vadd.f32 %v1457_v31, %v1309_v1 }
 0x27a   : >> { %v2878_v23 = vpop.eup %2877  ;;  %2897 = vtanh.f32 %v1456_v62  ;;  %v1617_v5 = vadd.f32 %v1616_v56, %v1309_v1  ;;  %v1618_v7 = vpop.f32.mrb[7].mxu1 }
 0x27b   : >> { %v2880_v8 = vpop.eup %2879  ;;  %2899 = vtanh.f32 %v1458_v11  ;;  %v1619_v3 = vadd.f32 %v1618_v7, %v1309_v1  ;;  %v1461_v18 = vpop.f32.mrb[8].mxu0 }
 0x27c   : >> { %v2882_v41 = vpop.eup %2881  ;;  %2901 = vtanh.f32 %v1617_v5  ;;  %v1462_v43 = vadd.f32 %v1461_v18, %v1314_v13  ;;  %v1463_v39 = vpop.f32.mrb[9].mxu0 }
 0x27d   : >> { %v2884_v53 = vpop.eup %2883  ;;  %2903 = vtanh.f32 %v1619_v3  ;;  %v1622_v44 = vpop.f32.mrb[8].mxu1  ;;  %v1464_v4 = vadd.f32 %v1463_v39, %v1314_v13  ;;  %v2541_v60 = vpack.c.bf16 %v2882_v41, %v2874_v12 }
 0x27e   : >> { %v2886_v59 = vpop.eup %2885  ;;  %2905 = vtanh.f32 %v1462_v43  ;;  %v1623_v6 = vadd.f32 %v1622_v44, %v1314_v13  ;;  %v1624_v55 = vpop.f32.mrb[9].mxu1  ;;  %v2539_v9 = vpack.c.bf16 %v2884_v53, %v2876_v40 }
 0x27f   : >> { %v2888_v17 = vpop.eup %2887  ;;  %2907 = vtanh.f32 %v1464_v4  ;;  %v1625_v14 = vadd.f32 %v1624_v55, %v1314_v13  ;;  %v1467_v20 = vpop.f32.mrb[10].mxu0  ;;  %v2573_v57 = vpack.c.bf16 %v2886_v59, %v2878_v23 }
 0x280   : >> { %v2890_v24 = vpop.eup %2889  ;;  %2909 = vtanh.f32 %v1623_v6  ;;  %v1468_v33 = vadd.f32 %v1467_v20, %v1319_v36  ;;  %v1469_v49 = vpop.f32.mrb[11].mxu0  ;;  %2540 = vmatprep.subr.bf16.mxu0 %v2539_v9  ;;  %v2571_v27 = vpack.c.bf16 %v2888_v17, %v2880_v8 }
 0x281   : >> { %v2892_v19 = vpop.eup %2891  ;;  %2911 = vtanh.f32 %v1625_v14  ;;  %v1628_v35 = vpop.f32.mrb[10].mxu1  ;;  %v1470_v25 = vadd.f32 %v1469_v49, %v1319_v36  ;;  %2542 = vmatpush1.bf16.msra.mxu0 %v2541_v60 }
 0x282   : >> { %v2894_v28 = vpop.eup %2893  ;;  %2913 = vtanh.f32 %v1468_v33  ;;  %v1629_v58 = vadd.f32 %v1628_v35, %v1319_v36  ;;  %v1630_v29 = vpop.f32.mrb[11].mxu1  ;;  %2572 = vmatprep.subr.bf16.mxu1 %v2571_v27 }
 0x283   : >> { %v2896_v42 = vpop.eup %2895  ;;  %2915 = vtanh.f32 %v1470_v25  ;;  %v1631_v1 = vadd.f32 %v1630_v29, %v1319_v36  ;;  %2574 = vmatpush1.bf16.msra.mxu1 %v2573_v57  ;;  %v1473_v37 = vpop.f32.mrb[12].mxu0 }
 0x284   : >> { %v2898_v45 = vpop.eup %2897  ;;  %2917 = vtanh.f32 %v1629_v58  ;;  %v1474_v12 = vadd.f32 %v1473_v37, %v1324_v32  ;;  %v1475_v62 = vpop.f32.mrb[13].mxu0 }
 0x285   : >> { %v2900_v31 = vpop.eup %2899  ;;  %2919 = vtanh.f32 %v1631_v1  ;;  %v1634_v40 = vpop.f32.mrb[12].mxu1  ;;  %v1476_v56 = vadd.f32 %v1475_v62, %v1324_v32  ;;  %v2545_v11 = vpack.c.bf16 %v2898_v45, %v2890_v24 }
 0x286   : >> { %v2902_v23 = vpop.eup %2901  ;;  %2921 = vtanh.f32 %v1474_v12  ;;  %v1635_v5 = vadd.f32 %v1634_v40, %v1324_v32  ;;  %v1636_v7 = vpop.f32.mrb[13].mxu1  ;;  %v2543_v8 = vpack.c.bf16 %v2900_v31, %v2892_v19 }
 0x287   : >> { %v2904_v13 = vpop.eup %2903  ;;  %v1329_v3 = vpop.permute.xlu0 %1328  ;;  %2923 = vtanh.f32 %v1476_v56  ;;  %v1637_v18 = vadd.f32 %v1636_v7, %v1324_v32  ;;  %v2577_v43 = vpack.c.bf16 %v2902_v23, %v2894_v28 }
 0x288   : >> { %v1479_v41 = vpop.f32.mrb[14].mxu0  ;;  %v2906_v39 = vpop.eup %2905  ;;  %2925 = vtanh.f32 %v1635_v5  ;;  %2544 = vmatprep.subr.bf16.mxu0 %v2543_v8  ;;  %v2575_v4 = vpack.c.bf16 %v2904_v13, %v2896_v42 }
 0x289   : >> { %v1480_v53 = vadd.f32 %v1479_v41, %v1329_v3  ;;  %v1481_v44 = vpop.f32.mrb[15].mxu0  ;;  %v2908_v60 = vpop.eup %2907  ;;  %2927 = vtanh.f32 %v1637_v18  ;;  %2546 = vmatpush1.bf16.msra.mxu0 %v2545_v11 }
 0x28a   : >> { %v1640_v59 = vpop.f32.mrb[14].mxu1  ;;  %v1482_v6 = vadd.f32 %v1481_v44, %v1329_v3  ;;  %v2910_v55 = vpop.eup %2909  ;;  %2576 = vmatprep.subr.bf16.mxu1 %v2575_v4 }
 0x28b   : >> { %2929 = vtanh.f32 %v1480_v53  ;;  %v1641_v9 = vadd.f32 %v1640_v59, %v1329_v3  ;;  %v1642_v17 = vpop.f32.mrb[15].mxu1  ;;  %v2912_v36 = vpop.eup %2911  ;;  %2578 = vmatpush1.bf16.msra.mxu1 %v2577_v43 }
 0x28c   : >> { %v1334_v14 = vpop.permute.xlu1 %1333  ;;  %2931 = vtanh.f32 %v1482_v6  ;;  %v1643_v20 = vadd.f32 %v1642_v17, %v1329_v3  ;;  %v1485_v57 = vpop.f32.mrb[16].mxu0 }
 0x28d   : >> { %v2914_v24 = vpop.eup %2913  ;;  %2933 = vtanh.f32 %v1641_v9  ;;  %v1486_v33 = vadd.f32 %v1485_v57, %v1334_v14  ;;  %v1487_v49 = vpop.f32.mrb[17].mxu0 }
 0x28e   : >> { %v2916_v27 = vpop.eup %2915  ;;  %2935 = vtanh.f32 %v1643_v20  ;;  %v1646_v19 = vpop.f32.mrb[16].mxu1  ;;  %v1488_v35 = vadd.f32 %v1487_v49, %v1334_v14  ;;  %v2549_v25 = vpack.c.bf16 %v2914_v24, %v2906_v39 }
 0x28f   : >> { %v2918_v28 = vpop.eup %2917  ;;  %2937 = vtanh.f32 %v1486_v33  ;;  %v1647_v58 = vadd.f32 %v1646_v19, %v1334_v14  ;;  %v1648_v29 = vpop.f32.mrb[17].mxu1  ;;  %v2547_v42 = vpack.c.bf16 %v2916_v27, %v2908_v60 }
 0x290   : >> { %v2920_v32 = vpop.eup %2919  ;;  %v1339_v1 = vpop.permute.xlu0 %1338  ;;  %2939 = vtanh.f32 %v1488_v35  ;;  %v1649_v37 = vadd.f32 %v1648_v29, %v1334_v14  ;;  %v2581_v12 = vpack.c.bf16 %v2918_v28, %v2910_v55 }
 0x291   : >> { %v1491_v45 = vpop.f32.mrb[18].mxu0  ;;  %v2922_v62 = vpop.eup %2921  ;;  %2941 = vtanh.f32 %v1647_v58  ;;  %2548 = vmatprep.subr.bf16.mxu0 %v2547_v42  ;;  %v2579_v56 = vpack.c.bf16 %v2920_v32, %v2912_v36 }
 0x292   : >> { %v1492_v31 = vadd.f32 %v1491_v45, %v1339_v1  ;;  %v1493_v40 = vpop.f32.mrb[19].mxu0  ;;  %v2924_v11 = vpop.eup %2923  ;;  %2943 = vtanh.f32 %v1649_v37  ;;  %2550 = vmatpush1.bf16.msra.mxu0 %v2549_v25 }
 0x293   : >> { %v1652_v23 = vpop.f32.mrb[18].mxu1  ;;  %v1494_v5 = vadd.f32 %v1493_v40, %v1339_v1  ;;  %v2926_v7 = vpop.eup %2925  ;;  %2580 = vmatprep.subr.bf16.mxu1 %v2579_v56 }
 0x294   : >> { %2945 = vtanh.f32 %v1492_v31  ;;  %v1653_v8 = vadd.f32 %v1652_v23, %v1339_v1  ;;  %v1654_v13 = vpop.f32.mrb[19].mxu1  ;;  %v2928_v3 = vpop.eup %2927  ;;  %2582 = vmatpush1.bf16.msra.mxu1 %v2581_v12 }
 0x295   : >> { %v1344_v18 = vpop.permute.xlu1 %1343  ;;  %2947 = vtanh.f32 %v1494_v5  ;;  %v1655_v41 = vadd.f32 %v1654_v13, %v1339_v1  ;;  %v1497_v43 = vpop.f32.mrb[20].mxu0 }
 0x296   : >> { %v2930_v39 = vpop.eup %2929  ;;  %2949 = vtanh.f32 %v1653_v8  ;;  %v1498_v53 = vadd.f32 %v1497_v43, %v1344_v18  ;;  %v1499_v44 = vpop.f32.mrb[21].mxu0 }
 0x297   : >> { %v2932_v4 = vpop.eup %2931  ;;  %2951 = vtanh.f32 %v1655_v41  ;;  %v1658_v60 = vpop.f32.mrb[20].mxu1  ;;  %v1500_v59 = vadd.f32 %v1499_v44, %v1344_v18  ;;  %v2553_v6 = vpack.c.bf16 %v2930_v39, %v2922_v62 }
 0x298   : >> { %v2934_v55 = vpop.eup %2933  ;;  %2953 = vtanh.f32 %v1498_v53  ;;  %v1659_v9 = vadd.f32 %v1658_v60, %v1344_v18  ;;  %v1660_v17 = vpop.f32.mrb[21].mxu1  ;;  %v2551_v36 = vpack.c.bf16 %v2932_v4, %v2924_v11 }
 0x299   : >> { %v2936_v14 = vpop.eup %2935  ;;  %v1349_v20 = vpop.permute.xlu0 %1348  ;;  %2955 = vtanh.f32 %v1500_v59  ;;  %v1661_v57 = vadd.f32 %v1660_v17, %v1344_v18  ;;  %v2585_v33 = vpack.c.bf16 %v2934_v55, %v2926_v7 }
 0x29a   : >> { %v1503_v24 = vpop.f32.mrb[22].mxu0  ;;  %v2938_v49 = vpop.eup %2937  ;;  %2957 = vtanh.f32 %v1659_v9  ;;  %2552 = vmatprep.subr.bf16.mxu0 %v2551_v36  ;;  %v2583_v35 = vpack.c.bf16 %v2936_v14, %v2928_v3 }
 0x29b   : >> { %v1504_v27 = vadd.f32 %v1503_v24, %v1349_v20  ;;  %v1505_v19 = vpop.f32.mrb[23].mxu0  ;;  %v2940_v25 = vpop.eup %2939  ;;  %2959 = vtanh.f32 %v1661_v57  ;;  %2554 = vmatpush1.bf16.msra.mxu0 %v2553_v6 }
 0x29c   : >> { %v1664_v28 = vpop.f32.mrb[22].mxu1  ;;  %v1506_v58 = vadd.f32 %v1505_v19, %v1349_v20  ;;  %v2942_v29 = vpop.eup %2941  ;;  %2584 = vmatprep.subr.bf16.mxu1 %v2583_v35 }
 0x29d   : >> { %2961 = vtanh.f32 %v1504_v27  ;;  %v1665_v42 = vadd.f32 %v1664_v28, %v1349_v20  ;;  %v1666_v32 = vpop.f32.mrb[23].mxu1  ;;  %v2944_v1 = vpop.eup %2943  ;;  %2586 = vmatpush1.bf16.msra.mxu1 %v2585_v33 }
 0x29e   : >> { %v1354_v37 = vpop.permute.xlu1 %1353  ;;  %2963 = vtanh.f32 %v1506_v58  ;;  %v1667_v45 = vadd.f32 %v1666_v32, %v1349_v20  ;;  %v1509_v12 = vpop.f32.mrb[24].mxu0 }
 0x29f   : >> { %v2946_v62 = vpop.eup %2945  ;;  %2965 = vtanh.f32 %v1665_v42  ;;  %v1510_v31 = vadd.f32 %v1509_v12, %v1354_v37  ;;  %v1511_v40 = vpop.f32.mrb[25].mxu0 }
 0x2a0   : >> { %v2948_v56 = vpop.eup %2947  ;;  %2967 = vtanh.f32 %v1667_v45  ;;  %v1670_v11 = vpop.f32.mrb[24].mxu1  ;;  %v1512_v23 = vadd.f32 %v1511_v40, %v1354_v37  ;;  %v2557_v5 = vpack.c.bf16 %v2946_v62, %v2938_v49 }
 0x2a1   : >> { %v2950_v7 = vpop.eup %2949  ;;  %2969 = vtanh.f32 %v1510_v31  ;;  %v1671_v8 = vadd.f32 %v1670_v11, %v1354_v37  ;;  %v1672_v13 = vpop.f32.mrb[25].mxu1  ;;  %v2555_v3 = vpack.c.bf16 %v2948_v56, %v2940_v25 }
 0x2a2   : >> { %v2952_v18 = vpop.eup %2951  ;;  %v1359_v41 = vpop.permute.xlu0 %1358  ;;  %2971 = vtanh.f32 %v1512_v23  ;;  %v1673_v43 = vadd.f32 %v1672_v13, %v1354_v37  ;;  %v2589_v53 = vpack.c.bf16 %v2950_v7, %v2942_v29 }
 0x2a3   : >> { %v1515_v39 = vpop.f32.mrb[26].mxu0  ;;  %v2954_v44 = vpop.eup %2953  ;;  %2973 = vtanh.f32 %v1671_v8  ;;  %2556 = vmatprep.subr.bf16.mxu0 %v2555_v3  ;;  %v2587_v59 = vpack.c.bf16 %v2952_v18, %v2944_v1 }
 0x2a4   : >> { %v1516_v4 = vadd.f32 %v1515_v39, %v1359_v41  ;;  %v1517_v60 = vpop.f32.mrb[27].mxu0  ;;  %v2956_v6 = vpop.eup %2955  ;;  %2975 = vtanh.f32 %v1673_v43  ;;  %2558 = vmatpush1.bf16.msra.mxu0 %v2557_v5 }
 0x2a5   : >> { %v1676_v55 = vpop.f32.mrb[26].mxu1  ;;  %v1518_v9 = vadd.f32 %v1517_v60, %v1359_v41  ;;  %v2958_v17 = vpop.eup %2957  ;;  %2588 = vmatprep.subr.bf16.mxu1 %v2587_v59 }
 0x2a6   : >> { %2977 = vtanh.f32 %v1516_v4  ;;  %v1677_v36 = vadd.f32 %v1676_v55, %v1359_v41  ;;  %v1678_v14 = vpop.f32.mrb[27].mxu1  ;;  %v2960_v20 = vpop.eup %2959  ;;  %2590 = vmatpush1.bf16.msra.mxu1 %v2589_v53 }
 0x2a7   : >> { %v1364_v57 = vpop.permute.xlu1 %1363  ;;  %2979 = vtanh.f32 %v1518_v9  ;;  %v1679_v24 = vadd.f32 %v1678_v14, %v1359_v41  ;;  %v1521_v33 = vpop.f32.mrb[28].mxu0 }
 0x2a8   : >> { %v2962_v49 = vpop.eup %2961  ;;  %2981 = vtanh.f32 %v1677_v36  ;;  %v1522_v27 = vadd.f32 %v1521_v33, %v1364_v57  ;;  %v1523_v19 = vpop.f32.mrb[29].mxu0 }
 0x2a9   : >> { %v2964_v35 = vpop.eup %2963  ;;  %2983 = vtanh.f32 %v1679_v24  ;;  %v1682_v25 = vpop.f32.mrb[28].mxu1  ;;  %v1524_v28 = vadd.f32 %v1523_v19, %v1364_v57  ;;  %v2561_v58 = vpack.c.bf16 %v2962_v49, %v2954_v44 }
 0x2aa   : >> { %v2966_v29 = vpop.eup %2965  ;;  %2985 = vtanh.f32 %v1522_v27  ;;  %v1683_v42 = vadd.f32 %v1682_v25, %v1364_v57  ;;  %v1684_v32 = vpop.f32.mrb[29].mxu1  ;;  %v2559_v1 = vpack.c.bf16 %v2964_v35, %v2956_v6  ;;  %v4932_v25 = vld [vmem:[#allocation67_spill] sm:$0xff] }
 0x2ab   : >> { %v2968_v37 = vpop.eup %2967  ;;  %v1369_v45 = vpop.permute.xlu0 %1368  ;;  %2987 = vtanh.f32 %v1524_v28  ;;  %v1685_v12 = vadd.f32 %v1684_v32, %v1364_v57  ;;  %v2593_v31 = vpack.c.bf16 %v2966_v29, %v2958_v17  ;;  %v4933_v28 = vld [vmem:[#allocation68_spill] sm:$0xff]  ;;  %v4935_v29 = vld [vmem:[#allocation70_spill] sm:$0xff] }
 0x2ac   : >> { %v1527_v62 = vpop.f32.mrb[30].mxu0  ;;  %v2970_v40 = vpop.eup %2969  ;;  %2989 = vtanh.f32 %v1683_v42  ;;  %2560 = vmatprep.subr.bf16.mxu0 %v2559_v1  ;;  %v2591_v23 = vpack.c.bf16 %v2968_v37, %v2960_v20  ;;  %v4936_v42 = vld [vmem:[#allocation71_spill] sm:$0xff]  ;;  %v4937_v32 = vld [vmem:[#allocation72_spill] sm:$0xff]  ;;  %v4938_v1 = vld [vmem:[#allocation73_spill] sm:$0xff] }
 0x2ad   : >> { %v1528_v56 = vadd.f32 %v1527_v62, %v1369_v45  ;;  %v1529_v11 = vpop.f32.mrb[31].mxu0  ;;  %v2972_v5 = vpop.eup %2971  ;;  %2991 = vtanh.f32 %v1685_v12  ;;  %2562 = vmatpush1.bf16.msra.mxu0 %v2561_v58  ;;  %v4934_v58 = vld [vmem:[#allocation69_spill] sm:$0xff]  ;;  %v4939_v37 = vld [vmem:[#allocation74_spill] sm:$0xff]  ;;  %v4941_v12 = vld [vmem:[#allocation76_spill] sm:$0xff] }
 0x2ae   : >> { %v1688_v7 = vpop.f32.mrb[30].mxu1  ;;  %v1530_v8 = vadd.f32 %v1529_v11, %v1369_v45  ;;  %v2974_v13 = vpop.eup %2973  ;;  %2592 = vmatprep.subr.bf16.mxu1 %v2591_v23  ;;  %v4942_v62 = vld [vmem:[#allocation77_spill] sm:$0xff]  ;;  %v4947_v23 = vld [vmem:[#allocation82_spill] sm:$0xff] }
 0x2af   : >> { %2993 = vtanh.f32 %v1528_v56  ;;  %v1689_v3 = vadd.f32 %v1688_v7, %v1369_v45  ;;  %v1690_v18 = vpop.f32.mrb[31].mxu1  ;;  %v2976_v41 = vpop.eup %2975  ;;  %2594 = vmatpush1.bf16.msra.mxu1 %v2593_v31  ;;  %v4943_v31 = vld [vmem:[#allocation78_spill] sm:$0xff]  ;;  %v4945_v56 = vld [vmem:[#allocation80_spill] sm:$0xff]  ;;  %v4946_v11 = vld [vmem:[#allocation81_spill] sm:$0xff] }
 0x2b0   : >> { %2995 = vtanh.f32 %v1530_v8  ;;  %v1691_v43 = vadd.f32 %v1690_v18, %v1369_v45  ;;  %v2978_v39 = vpop.eup %2977  ;;  %v4940_v45 = vld [vmem:[#allocation75_spill] sm:$0xff] }
 0x2b1   : >> { %2997 = vtanh.f32 %v1689_v3  ;;  %v2980_v53 = vpop.eup %2979  ;;  %v2565_v44 = vpack.c.bf16 %v2978_v39, %v2970_v40  ;;  %v4944_v40 = vld [vmem:[#allocation79_spill] sm:$0xff]  ;;  %v1765_v39 = vpop.permute.xlu0 %1764 }
 0x2b2   : >> { %2999 = vtanh.f32 %v1691_v43  ;;  %v2982_v4 = vpop.eup %2981  ;;  %v2563_v60 = vpack.c.bf16 %v2980_v53, %v2972_v5  ;;  %v1760_v5 = vpop.permute.xlu1 %1759 }
 0x2b3   : >> { %v2984_v59 = vpop.eup %2983  ;;  %v2597_v6 = vpack.c.bf16 %v2982_v4, %v2974_v13 }
 0x2b4   : >> { %v2986_v55 = vpop.eup %2985  ;;  %2564 = vmatprep.subr.bf16.mxu0 %v2563_v60  ;;  %v2595_v9 = vpack.c.bf16 %v2984_v59, %v2976_v41 }
 0x2b5   : >> { %v2988_v17 = vpop.eup %2987  ;;  %2566 = vmatpush1.bf16.msra.mxu0 %v2565_v44 }
 0x2b6   : >> { %v2990_v36 = vpop.eup %2989  ;;  %2596 = vmatprep.subr.bf16.mxu1 %v2595_v9  ;;  %v1770_v9 = vpop.permute.xlu1 %1769 }
 0x2b7   : >> { %v2992_v14 = vpop.eup %2991  ;;  %2598 = vmatpush1.bf16.msra.mxu1 %v2597_v6 }
 0x2b9   : >> { %v2994_v20 = vpop.eup %2993 }
 0x2ba   : >> { %v2996_v57 = vpop.eup %2995  ;;  %v2569_v24 = vpack.c.bf16 %v2994_v20, %v2986_v55 }
 0x2bb   : >> { %v2998_v33 = vpop.eup %2997  ;;  %v2567_v49 = vpack.c.bf16 %v2996_v57, %v2988_v17 }
 0x2bc   : >> { %v3000_v27 = vpop.eup %2999  ;;  %v2601_v19 = vpack.c.bf16 %v2998_v33, %v2990_v36 }
 0x2bd   : >> { %2568 = vmatprep.subr.bf16.mxu0 %v2567_v49  ;;  %v2599_v35 = vpack.c.bf16 %v3000_v27, %v2992_v14  ;;  %v1775_v27 = vpop.permute.xlu0 %1774 }
 0x2be   : >> { %2570 = vmatpush1.bf16.msra.mxu0 %v2569_v24 }
 0x2bf   : >> { %2600 = vmatprep.subr.bf16.mxu1 %v2599_v35 }
 0x2c0   : >> { %2602 = vmatpush1.bf16.msra.mxu1 %v2601_v19 }
 0x2c1   : >> { %1902 = vmatmul.mubr.f32.vlgmr.msra.gmra.mrb[32].mxu0 %v4932_v25 }
 0x2c2   : >> { %1907 = vmatprep.mubr.f32.mxu0 %v3204_v0 }
 0x2c3   : >> { %2063 = vmatmul.mubr.f32.vlgmr.msra.gmra.mrb[32].mxu1 %v4932_v25 }
 0x2c4   : >> { %2068 = vmatprep.mubr.f32.mxu1 %v3204_v0 }
 0x2c5   : >> { %1908 = vmatmul.mubr.f32.gmra.mrb[34].mxu0 %v4933_v28 }
 0x2c6   : >> { %1913 = vmatprep.mubr.f32.mxu0 %v3204_v0 }
 0x2c7   : >> { %2069 = vmatmul.mubr.f32.gmra.mrb[34].mxu1 %v4933_v28 }
 0x2c8   : >> { %2074 = vmatprep.mubr.f32.mxu1 %v3204_v0 }
 0x2c9   : >> { %1914 = vmatmul.mubr.f32.gmra.mrb[36].mxu0 %v4934_v58 }
 0x2ca   : >> { %1919 = vmatprep.mubr.f32.mxu0 %v3204_v0 }
 0x2cb   : >> { %2075 = vmatmul.mubr.f32.gmra.mrb[36].mxu1 %v4934_v58 }
 0x2cc   : >> { %2080 = vmatprep.mubr.f32.mxu1 %v3204_v0 }
 0x2cd   : >> { %1920 = vmatmul.mubr.f32.gmra.mrb[38].mxu0 %v4935_v29 }
 0x2ce   : >> { %1925 = vmatprep.mubr.f32.mxu0 %v3204_v0 }
 0x2cf   : >> { %2081 = vmatmul.mubr.f32.gmra.mrb[38].mxu1 %v4935_v29 }
 0x2d0   : >> { %2086 = vmatprep.mubr.f32.mxu1 %v3204_v0 }
 0x2d1   : >> { %1926 = vmatmul.mubr.f32.gmra.mrb[40].mxu0 %v4936_v42 }
 0x2d2   : >> { %1931 = vmatprep.mubr.f32.mxu0 %v3204_v0 }
 0x2d3   : >> { %2087 = vmatmul.mubr.f32.gmra.mrb[40].mxu1 %v4936_v42 }
 0x2d4   : >> { %2092 = vmatprep.mubr.f32.mxu1 %v3204_v0 }
 0x2d5   : >> { %1932 = vmatmul.mubr.f32.gmra.mrb[42].mxu0 %v4937_v32 }
 0x2d6   : >> { %1937 = vmatprep.mubr.f32.mxu0 %v3204_v0 }
 0x2d7   : >> { %2093 = vmatmul.mubr.f32.gmra.mrb[42].mxu1 %v4937_v32 }
 0x2d8   : >> { %2098 = vmatprep.mubr.f32.mxu1 %v3204_v0 }
 0x2d9   : >> { %1938 = vmatmul.mubr.f32.gmra.mrb[44].mxu0 %v4938_v1 }
 0x2da   : >> { %1943 = vmatprep.mubr.f32.mxu0 %v3204_v0 }
 0x2db   : >> { %2099 = vmatmul.mubr.f32.gmra.mrb[44].mxu1 %v4938_v1 }
 0x2dc   : >> { %2104 = vmatprep.mubr.f32.mxu1 %v3204_v0 }
 0x2dd   : >> { %1944 = vmatmul.mubr.f32.gmra.mrb[46].mxu0 %v4939_v37 }
 0x2de   : >> { %1949 = vmatprep.mubr.f32.mxu0 %v3204_v0 }
 0x2df   : >> { %2105 = vmatmul.mubr.f32.gmra.mrb[46].mxu1 %v4939_v37 }
 0x2e0   : >> { %2110 = vmatprep.mubr.f32.mxu1 %v3204_v0 }
 0x2e1   : >> { %1950 = vmatmul.mubr.f32.gmra.mrb[48].mxu0 %v4940_v45 }
 0x2e2   : >> { %1955 = vmatprep.mubr.f32.mxu0 %v3204_v0 }
 0x2e3   : >> { %2111 = vmatmul.mubr.f32.gmra.mrb[48].mxu1 %v4940_v45 }
 0x2e4   : >> { %2116 = vmatprep.mubr.f32.mxu1 %v3204_v0 }
 0x2e5   : >> { %1956 = vmatmul.mubr.f32.gmra.mrb[50].mxu0 %v4941_v12 }
 0x2e6   : >> { %1961 = vmatprep.mubr.f32.mxu0 %v3204_v0 }
 0x2e7   : >> { %2117 = vmatmul.mubr.f32.gmra.mrb[50].mxu1 %v4941_v12 }
 0x2e8   : >> { %2122 = vmatprep.mubr.f32.mxu1 %v3204_v0 }
 0x2e9   : >> { %1962 = vmatmul.mubr.f32.gmra.mrb[52].mxu0 %v4942_v62 }
 0x2ea   : >> { %1967 = vmatprep.mubr.f32.mxu0 %v3204_v0 }
 0x2eb   : >> { %2123 = vmatmul.mubr.f32.gmra.mrb[52].mxu1 %v4942_v62 }
 0x2ec   : >> { %2128 = vmatprep.mubr.f32.mxu1 %v3204_v0 }
 0x2ed   : >> { %1968 = vmatmul.mubr.f32.gmra.mrb[54].mxu0 %v4943_v31 }
 0x2ee   : >> { %1973 = vmatprep.mubr.f32.mxu0 %v3204_v0 }
 0x2ef   : >> { %2129 = vmatmul.mubr.f32.gmra.mrb[54].mxu1 %v4943_v31 }
 0x2f0   : >> { %2134 = vmatprep.mubr.f32.mxu1 %v3204_v0 }
 0x2f1   : >> { %1974 = vmatmul.mubr.f32.gmra.mrb[56].mxu0 %v4944_v40 }
 0x2f2   : >> { %1979 = vmatprep.mubr.f32.mxu0 %v3204_v0 }
 0x2f3   : >> { %2135 = vmatmul.mubr.f32.gmra.mrb[56].mxu1 %v4944_v40 }
 0x2f4   : >> { %2140 = vmatprep.mubr.f32.mxu1 %v3204_v0 }
 0x2f5   : >> { %1980 = vmatmul.mubr.f32.gmra.mrb[58].mxu0 %v4945_v56 }
 0x2f6   : >> { %1985 = vmatprep.mubr.f32.mxu0 %v3204_v0 }
 0x2f7   : >> { %2141 = vmatmul.mubr.f32.gmra.mrb[58].mxu1 %v4945_v56 }
 0x2f8   : >> { %2146 = vmatprep.mubr.f32.mxu1 %v3204_v0 }
 0x2f9   : >> { %1986 = vmatmul.mubr.f32.gmra.mrb[60].mxu0 %v4946_v11 }
 0x2fa   : >> { %1991 = vmatprep.mubr.f32.mxu0 %v3204_v0 }
 0x2fb   : >> { %2147 = vmatmul.mubr.f32.gmra.mrb[60].mxu1 %v4946_v11 }
 0x2fc   : >> { %2152 = vmatprep.mubr.f32.mxu1 %v3204_v0 }
 0x2fd   : >> { %1992 = vmatmul.mubr.f32.gmra.mrb[62].mxu0 %v4947_v23 }
 0x2fe   : >> { %2292 = vmatprep.mubr.f32.mxu0 %v3204_v0 }
 0x2ff   : >> { %2153 = vmatmul.mubr.f32.gmra.mrb[62].mxu1 %v4947_v23 }
 0x300   : >> { %2363 = vmatprep.mubr.f32.mxu1 %v3204_v0 }
 0x394   : >> { %v1903_v7 = vpop.f32.mrb[32].mxu0 }
 0x395   : >> { %v1904_v8 = vadd.f32 %v1903_v7, %v1760_v5  ;;  %v1905_v13 = vpop.f32.mrb[33].mxu0 }
 0x396   : >> { %v2064_v3 = vpop.f32.mrb[32].mxu1  ;;  %v1906_v18 = vadd.f32 %v1905_v13, %v1760_v5 }
 0x397   : >> { %3001 = vtanh.f32 %v1904_v8  ;;  %v2065_v41 = vadd.f32 %v2064_v3, %v1760_v5  ;;  %v2066_v43 = vpop.f32.mrb[33].mxu1 }
 0x398   : >> { %3003 = vtanh.f32 %v1906_v18  ;;  %v2067_v53 = vadd.f32 %v2066_v43, %v1760_v5  ;;  %v1909_v44 = vpop.f32.mrb[34].mxu0 }
 0x399   : >> { %3005 = vtanh.f32 %v2065_v41  ;;  %v1910_v4 = vadd.f32 %v1909_v44, %v1765_v39  ;;  %v1911_v60 = vpop.f32.mrb[35].mxu0  ;;  %v1780_v44 = vpop.permute.xlu1 %1779 }
 0x39a   : >> { %3007 = vtanh.f32 %v2067_v53  ;;  %v2070_v59 = vpop.f32.mrb[34].mxu1  ;;  %v1912_v6 = vadd.f32 %v1911_v60, %v1765_v39 }
 0x39b   : >> { %3009 = vtanh.f32 %v1910_v4  ;;  %v2071_v0 = vadd.f32 %v2070_v59, %v1765_v39  ;;  %v2072_v55 = vpop.f32.mrb[35].mxu1 }
 0x39c   : >> { %3011 = vtanh.f32 %v1912_v6  ;;  %v2073_v17 = vadd.f32 %v2072_v55, %v1765_v39  ;;  %v1915_v36 = vpop.f32.mrb[36].mxu0 }
 0x39d   : >> { %3013 = vtanh.f32 %v2071_v0  ;;  %v1916_v14 = vadd.f32 %v1915_v36, %v1770_v9  ;;  %v1917_v20 = vpop.f32.mrb[37].mxu0 }
 0x39e   : >> { %3015 = vtanh.f32 %v2073_v17  ;;  %v2076_v57 = vpop.f32.mrb[36].mxu1  ;;  %v1918_v24 = vadd.f32 %v1917_v20, %v1770_v9 }
 0x39f   : >> { %3017 = vtanh.f32 %v1916_v14  ;;  %v2077_v33 = vadd.f32 %v2076_v57, %v1770_v9  ;;  %v2078_v49 = vpop.f32.mrb[37].mxu1 }
 0x3a0   : >> { %3019 = vtanh.f32 %v1918_v24  ;;  %v2079_v19 = vadd.f32 %v2078_v49, %v1770_v9  ;;  %v1921_v35 = vpop.f32.mrb[38].mxu0  ;;  %v1785_v49 = vpop.permute.xlu0 %1784 }
 0x3a1   : >> { %v3002_v5 = vpop.eup %3001  ;;  %3021 = vtanh.f32 %v2077_v33  ;;  %v1922_v7 = vadd.f32 %v1921_v35, %v1775_v27  ;;  %v1923_v8 = vpop.f32.mrb[39].mxu0 }
 0x3a2   : >> { %v3004_v13 = vpop.eup %3003  ;;  %3023 = vtanh.f32 %v2079_v19  ;;  %v2082_v3 = vpop.f32.mrb[38].mxu1  ;;  %v1924_v18 = vadd.f32 %v1923_v8, %v1775_v27 }
 0x3a3   : >> { %v3006_v41 = vpop.eup %3005  ;;  %3025 = vtanh.f32 %v1922_v7  ;;  %v2083_v43 = vadd.f32 %v2082_v3, %v1775_v27  ;;  %v2084_v39 = vpop.f32.mrb[39].mxu1 }
 0x3a4   : >> { %v3008_v53 = vpop.eup %3007  ;;  %3027 = vtanh.f32 %v1924_v18  ;;  %v2085_v4 = vadd.f32 %v2084_v39, %v1775_v27  ;;  %v1927_v60 = vpop.f32.mrb[40].mxu0 }
 0x3a5   : >> { %v3010_v59 = vpop.eup %3009  ;;  %3029 = vtanh.f32 %v2083_v43  ;;  %v1928_v6 = vadd.f32 %v1927_v60, %v1780_v44  ;;  %v1929_v0 = vpop.f32.mrb[41].mxu0 }
 0x3a6   : >> { %v3012_v55 = vpop.eup %3011  ;;  %3031 = vtanh.f32 %v2085_v4  ;;  %v2088_v9 = vpop.f32.mrb[40].mxu1  ;;  %v1930_v17 = vadd.f32 %v1929_v0, %v1780_v44  ;;  %v2605_v36 = vpack.c.bf16 %v3010_v59, %v3002_v5 }
 0x3a7   : >> { %v3014_v14 = vpop.eup %3013  ;;  %3033 = vtanh.f32 %v1928_v6  ;;  %v2089_v20 = vadd.f32 %v2088_v9, %v1780_v44  ;;  %v2090_v57 = vpop.f32.mrb[41].mxu1  ;;  %v2603_v24 = vpack.c.bf16 %v3012_v55, %v3004_v13 }
 0x3a8   : >> { %v3016_v33 = vpop.eup %3015  ;;  %3035 = vtanh.f32 %v1930_v17  ;;  %v2091_v19 = vadd.f32 %v2090_v57, %v1780_v44  ;;  %v1933_v27 = vpop.f32.mrb[42].mxu0  ;;  %v2637_v35 = vpack.c.bf16 %v3014_v14, %v3006_v41 }
 0x3a9   : >> { %v3018_v7 = vpop.eup %3017  ;;  %3037 = vtanh.f32 %v2089_v20  ;;  %v1934_v8 = vadd.f32 %v1933_v27, %v1785_v49  ;;  %v1935_v3 = vpop.f32.mrb[43].mxu0  ;;  %2604 = vmatprep.subr.bf16.mxu0 %v2603_v24  ;;  %v2635_v18 = vpack.c.bf16 %v3016_v33, %v3008_v53 }
 0x3aa   : >> { %v3020_v43 = vpop.eup %3019  ;;  %3039 = vtanh.f32 %v2091_v19  ;;  %v2094_v5 = vpop.f32.mrb[42].mxu1  ;;  %v1936_v39 = vadd.f32 %v1935_v3, %v1785_v49  ;;  %2606 = vmatpush1.bf16.msra.mxu0 %v2605_v36 }
 0x3ab   : >> { %v3022_v4 = vpop.eup %3021  ;;  %3041 = vtanh.f32 %v1934_v8  ;;  %v2095_v13 = vadd.f32 %v2094_v5, %v1785_v49  ;;  %v2096_v60 = vpop.f32.mrb[43].mxu1  ;;  %2636 = vmatprep.subr.bf16.mxu1 %v2635_v18 }
 0x3ac   : >> { %v3024_v59 = vpop.eup %3023  ;;  %v1790_v44 = vpop.permute.xlu1 %1789  ;;  %3043 = vtanh.f32 %v1936_v39  ;;  %v2097_v41 = vadd.f32 %v2096_v60, %v1785_v49  ;;  %2638 = vmatpush1.bf16.msra.mxu1 %v2637_v35 }
 0x3ad   : >> { %v1939_v6 = vpop.f32.mrb[44].mxu0  ;;  %v3026_v0 = vpop.eup %3025  ;;  %3045 = vtanh.f32 %v2095_v13 }
 0x3ae   : >> { %v1940_v55 = vadd.f32 %v1939_v6, %v1790_v44  ;;  %v1941_v53 = vpop.f32.mrb[45].mxu0  ;;  %v3028_v9 = vpop.eup %3027  ;;  %3047 = vtanh.f32 %v2097_v41  ;;  %v2609_v36 = vpack.c.bf16 %v3026_v0, %v3018_v7 }
 0x3af   : >> { %v2100_v17 = vpop.f32.mrb[44].mxu1  ;;  %v1942_v14 = vadd.f32 %v1941_v53, %v1790_v44  ;;  %v3030_v20 = vpop.eup %3029  ;;  %v2607_v33 = vpack.c.bf16 %v3028_v9, %v3020_v43 }
 0x3b0   : >> { %3049 = vtanh.f32 %v1940_v55  ;;  %v2101_v57 = vadd.f32 %v2100_v17, %v1790_v44  ;;  %v2102_v24 = vpop.f32.mrb[45].mxu1  ;;  %v3032_v19 = vpop.eup %3031  ;;  %v2641_v8 = vpack.c.bf16 %v3030_v20, %v3022_v4 }
 0x3b1   : >> { %v1795_v27 = vpop.permute.xlu0 %1794  ;;  %3051 = vtanh.f32 %v1942_v14  ;;  %v2103_v49 = vadd.f32 %v2102_v24, %v1790_v44  ;;  %v1945_v35 = vpop.f32.mrb[46].mxu0  ;;  %2608 = vmatprep.subr.bf16.mxu0 %v2607_v33  ;;  %v2639_v39 = vpack.c.bf16 %v3032_v19, %v3024_v59 }
 0x3b2   : >> { %v3034_v3 = vpop.eup %3033  ;;  %3053 = vtanh.f32 %v2101_v57  ;;  %v1946_v18 = vadd.f32 %v1945_v35, %v1795_v27  ;;  %v1947_v5 = vpop.f32.mrb[47].mxu0  ;;  %2610 = vmatpush1.bf16.msra.mxu0 %v2609_v36 }
 0x3b3   : >> { %v3036_v13 = vpop.eup %3035  ;;  %3055 = vtanh.f32 %v2103_v49  ;;  %v2106_v7 = vpop.f32.mrb[46].mxu1  ;;  %v1948_v60 = vadd.f32 %v1947_v5, %v1795_v27  ;;  %2640 = vmatprep.subr.bf16.mxu1 %v2639_v39 }
 0x3b4   : >> { %v3038_v41 = vpop.eup %3037  ;;  %3057 = vtanh.f32 %v1946_v18  ;;  %v2107_v43 = vadd.f32 %v2106_v7, %v1795_v27  ;;  %v2108_v6 = vpop.f32.mrb[47].mxu1  ;;  %2642 = vmatpush1.bf16.msra.mxu1 %v2641_v8 }
 0x3b5   : >> { %v3040_v0 = vpop.eup %3039  ;;  %v1800_v44 = vpop.permute.xlu1 %1799  ;;  %3059 = vtanh.f32 %v1948_v60  ;;  %v2109_v4 = vadd.f32 %v2108_v6, %v1795_v27 }
 0x3b6   : >> { %v1951_v55 = vpop.f32.mrb[48].mxu0  ;;  %v3042_v53 = vpop.eup %3041  ;;  %3061 = vtanh.f32 %v2107_v43 }
 0x3b7   : >> { %v1952_v9 = vadd.f32 %v1951_v55, %v1800_v44  ;;  %v1953_v59 = vpop.f32.mrb[49].mxu0  ;;  %v3044_v17 = vpop.eup %3043  ;;  %3063 = vtanh.f32 %v2109_v4  ;;  %v2613_v36 = vpack.c.bf16 %v3042_v53, %v3034_v3 }
 0x3b8   : >> { %v2112_v14 = vpop.f32.mrb[48].mxu1  ;;  %v1954_v20 = vadd.f32 %v1953_v59, %v1800_v44  ;;  %v3046_v57 = vpop.eup %3045  ;;  %v2611_v19 = vpack.c.bf16 %v3044_v17, %v3036_v13 }
 0x3b9   : >> { %3065 = vtanh.f32 %v1952_v9  ;;  %v2113_v24 = vadd.f32 %v2112_v14, %v1800_v44  ;;  %v2114_v33 = vpop.f32.mrb[49].mxu1  ;;  %v3048_v49 = vpop.eup %3047  ;;  %v2645_v18 = vpack.c.bf16 %v3046_v57, %v3038_v41 }
 0x3ba   : >> { %v1805_v35 = vpop.permute.xlu0 %1804  ;;  %3067 = vtanh.f32 %v1954_v20  ;;  %v2115_v27 = vadd.f32 %v2114_v33, %v1800_v44  ;;  %v1957_v8 = vpop.f32.mrb[50].mxu0  ;;  %2612 = vmatprep.subr.bf16.mxu0 %v2611_v19  ;;  %v2643_v60 = vpack.c.bf16 %v3048_v49, %v3040_v0 }
 0x3bb   : >> { %v3050_v5 = vpop.eup %3049  ;;  %3069 = vtanh.f32 %v2113_v24  ;;  %v1958_v39 = vadd.f32 %v1957_v8, %v1805_v35  ;;  %v1959_v7 = vpop.f32.mrb[51].mxu0  ;;  %2614 = vmatpush1.bf16.msra.mxu0 %v2613_v36 }
 0x3bc   : >> { %v3052_v43 = vpop.eup %3051  ;;  %3071 = vtanh.f32 %v2115_v27  ;;  %v2118_v3 = vpop.f32.mrb[50].mxu1  ;;  %v1960_v6 = vadd.f32 %v1959_v7, %v1805_v35  ;;  %2644 = vmatprep.subr.bf16.mxu1 %v2643_v60 }
 0x3bd   : >> { %v3054_v4 = vpop.eup %3053  ;;  %3073 = vtanh.f32 %v1958_v39  ;;  %v2119_v13 = vadd.f32 %v2118_v3, %v1805_v35  ;;  %v2120_v55 = vpop.f32.mrb[51].mxu1  ;;  %2646 = vmatpush1.bf16.msra.mxu1 %v2645_v18 }
 0x3be   : >> { %v3056_v53 = vpop.eup %3055  ;;  %v1810_v44 = vpop.permute.xlu1 %1809  ;;  %3075 = vtanh.f32 %v1960_v6  ;;  %v2121_v41 = vadd.f32 %v2120_v55, %v1805_v35 }
 0x3bf   : >> { %v1963_v9 = vpop.f32.mrb[52].mxu0  ;;  %v3058_v59 = vpop.eup %3057  ;;  %3077 = vtanh.f32 %v2119_v13 }
 0x3c0   : >> { %v1964_v17 = vadd.f32 %v1963_v9, %v1810_v44  ;;  %v1965_v0 = vpop.f32.mrb[53].mxu0  ;;  %v3060_v14 = vpop.eup %3059  ;;  %3079 = vtanh.f32 %v2121_v41  ;;  %v2617_v36 = vpack.c.bf16 %v3058_v59, %v3050_v5 }
 0x3c1   : >> { %v2124_v20 = vpop.f32.mrb[52].mxu1  ;;  %v1966_v57 = vadd.f32 %v1965_v0, %v1810_v44  ;;  %v3062_v24 = vpop.eup %3061  ;;  %v2615_v49 = vpack.c.bf16 %v3060_v14, %v3052_v43 }
 0x3c2   : >> { %3081 = vtanh.f32 %v1964_v17  ;;  %v2125_v33 = vadd.f32 %v2124_v20, %v1810_v44  ;;  %v2126_v19 = vpop.f32.mrb[53].mxu1  ;;  %v3064_v27 = vpop.eup %3063  ;;  %v2649_v39 = vpack.c.bf16 %v3062_v24, %v3054_v4 }
 0x3c3   : >> { %v1815_v8 = vpop.permute.xlu0 %1814  ;;  %3083 = vtanh.f32 %v1966_v57  ;;  %v2127_v35 = vadd.f32 %v2126_v19, %v1810_v44  ;;  %v1969_v18 = vpop.f32.mrb[54].mxu0  ;;  %2616 = vmatprep.subr.bf16.mxu0 %v2615_v49  ;;  %v2647_v6 = vpack.c.bf16 %v3064_v27, %v3056_v53 }
 0x3c4   : >> { %v3066_v7 = vpop.eup %3065  ;;  %3085 = vtanh.f32 %v2125_v33  ;;  %v1970_v60 = vadd.f32 %v1969_v18, %v1815_v8  ;;  %v1971_v3 = vpop.f32.mrb[55].mxu0  ;;  %2618 = vmatpush1.bf16.msra.mxu0 %v2617_v36 }
 0x3c5   : >> { %v3068_v13 = vpop.eup %3067  ;;  %3087 = vtanh.f32 %v2127_v35  ;;  %v2130_v5 = vpop.f32.mrb[54].mxu1  ;;  %v1972_v55 = vadd.f32 %v1971_v3, %v1815_v8  ;;  %2648 = vmatprep.subr.bf16.mxu1 %v2647_v6 }
 0x3c6   : >> { %v3070_v41 = vpop.eup %3069  ;;  %3089 = vtanh.f32 %v1970_v60  ;;  %v2131_v43 = vadd.f32 %v2130_v5, %v1815_v8  ;;  %v2132_v9 = vpop.f32.mrb[55].mxu1  ;;  %2650 = vmatpush1.bf16.msra.mxu1 %v2649_v39 }
 0x3c7   : >> { %v3072_v59 = vpop.eup %3071  ;;  %v1820_v44 = vpop.permute.xlu1 %1819  ;;  %3091 = vtanh.f32 %v1972_v55  ;;  %v2133_v4 = vadd.f32 %v2132_v9, %v1815_v8 }
 0x3c8   : >> { %v1975_v17 = vpop.f32.mrb[56].mxu0  ;;  %v3074_v0 = vpop.eup %3073  ;;  %3093 = vtanh.f32 %v2131_v43 }
 0x3c9   : >> { %v1976_v14 = vadd.f32 %v1975_v17, %v1820_v44  ;;  %v1977_v53 = vpop.f32.mrb[57].mxu0  ;;  %v3076_v20 = vpop.eup %3075  ;;  %3095 = vtanh.f32 %v2133_v4  ;;  %v2621_v36 = vpack.c.bf16 %v3074_v0, %v3066_v7 }
 0x3ca   : >> { %v2136_v57 = vpop.f32.mrb[56].mxu1  ;;  %v1978_v24 = vadd.f32 %v1977_v53, %v1820_v44  ;;  %v3078_v33 = vpop.eup %3077  ;;  %v2619_v27 = vpack.c.bf16 %v3076_v20, %v3068_v13 }
 0x3cb   : >> { %3097 = vtanh.f32 %v1976_v14  ;;  %v2137_v19 = vadd.f32 %v2136_v57, %v1820_v44  ;;  %v2138_v49 = vpop.f32.mrb[57].mxu1  ;;  %v3080_v35 = vpop.eup %3079  ;;  %v2653_v60 = vpack.c.bf16 %v3078_v33, %v3070_v41 }
 0x3cc   : >> { %v1825_v18 = vpop.permute.xlu0 %1824  ;;  %3099 = vtanh.f32 %v1978_v24  ;;  %v2139_v8 = vadd.f32 %v2138_v49, %v1820_v44  ;;  %v1981_v39 = vpop.f32.mrb[58].mxu0  ;;  %2620 = vmatprep.subr.bf16.mxu0 %v2619_v27  ;;  %v2651_v55 = vpack.c.bf16 %v3080_v35, %v3072_v59 }
 0x3cd   : >> { %v3082_v3 = vpop.eup %3081  ;;  %3101 = vtanh.f32 %v2137_v19  ;;  %v1982_v6 = vadd.f32 %v1981_v39, %v1825_v18  ;;  %v1983_v5 = vpop.f32.mrb[59].mxu0  ;;  %2622 = vmatpush1.bf16.msra.mxu0 %v2621_v36 }
 0x3ce   : >> { %v3084_v43 = vpop.eup %3083  ;;  %3103 = vtanh.f32 %v2139_v8  ;;  %v2142_v7 = vpop.f32.mrb[58].mxu1  ;;  %v1984_v9 = vadd.f32 %v1983_v5, %v1825_v18  ;;  %2652 = vmatprep.subr.bf16.mxu1 %v2651_v55 }
 0x3cf   : >> { %v3086_v4 = vpop.eup %3085  ;;  %3105 = vtanh.f32 %v1982_v6  ;;  %v2143_v13 = vadd.f32 %v2142_v7, %v1825_v18  ;;  %v2144_v17 = vpop.f32.mrb[59].mxu1  ;;  %2654 = vmatpush1.bf16.msra.mxu1 %v2653_v60 }
 0x3d0   : >> { %v3088_v0 = vpop.eup %3087  ;;  %v1830_v44 = vpop.permute.xlu1 %1829  ;;  %3107 = vtanh.f32 %v1984_v9  ;;  %v2145_v41 = vadd.f32 %v2144_v17, %v1825_v18 }
 0x3d1   : >> { %v1987_v14 = vpop.f32.mrb[60].mxu0  ;;  %v3090_v53 = vpop.eup %3089  ;;  %3109 = vtanh.f32 %v2143_v13 }
 0x3d2   : >> { %v1988_v20 = vadd.f32 %v1987_v14, %v1830_v44  ;;  %v1989_v59 = vpop.f32.mrb[61].mxu0  ;;  %v3092_v57 = vpop.eup %3091  ;;  %3111 = vtanh.f32 %v2145_v41  ;;  %v2625_v36 = vpack.c.bf16 %v3090_v53, %v3082_v3 }
 0x3d3   : >> { %v2148_v24 = vpop.f32.mrb[60].mxu1  ;;  %v1990_v33 = vadd.f32 %v1989_v59, %v1830_v44  ;;  %v3094_v19 = vpop.eup %3093  ;;  %v2623_v35 = vpack.c.bf16 %v3092_v57, %v3084_v43 }
 0x3d4   : >> { %3113 = vtanh.f32 %v1988_v20  ;;  %v2149_v49 = vadd.f32 %v2148_v24, %v1830_v44  ;;  %v2150_v27 = vpop.f32.mrb[61].mxu1  ;;  %v3096_v8 = vpop.eup %3095  ;;  %v2657_v6 = vpack.c.bf16 %v3094_v19, %v3086_v4 }
 0x3d5   : >> { %v1835_v39 = vpop.permute.xlu0 %1834  ;;  %3115 = vtanh.f32 %v1990_v33  ;;  %v2151_v18 = vadd.f32 %v2150_v27, %v1830_v44  ;;  %v1993_v60 = vpop.f32.mrb[62].mxu0  ;;  %2624 = vmatprep.subr.bf16.mxu0 %v2623_v35  ;;  %v2655_v9 = vpack.c.bf16 %v3096_v8, %v3088_v0 }
 0x3d6   : >> { %v3098_v5 = vpop.eup %3097  ;;  %3117 = vtanh.f32 %v2149_v49  ;;  %v1994_v55 = vadd.f32 %v1993_v60, %v1835_v39  ;;  %v1995_v7 = vpop.f32.mrb[63].mxu0  ;;  %2626 = vmatpush1.bf16.msra.mxu0 %v2625_v36 }
 0x3d7   : >> { %v3100_v13 = vpop.eup %3099  ;;  %3119 = vtanh.f32 %v2151_v18  ;;  %v2154_v3 = vpop.f32.mrb[62].mxu1  ;;  %v1996_v17 = vadd.f32 %v1995_v7, %v1835_v39  ;;  %2656 = vmatprep.subr.bf16.mxu1 %v2655_v9  ;;  %v4948_v9 = vld [vmem:[#allocation99_spill] sm:$0xff] }
 0x3d8   : >> { %v3102_v41 = vpop.eup %3101  ;;  %3121 = vtanh.f32 %v1994_v55  ;;  %v2155_v43 = vadd.f32 %v2154_v3, %v1835_v39  ;;  %v2156_v14 = vpop.f32.mrb[63].mxu1  ;;  %2658 = vmatpush1.bf16.msra.mxu1 %v2657_v6 }
 0x3d9   : >> { %v3104_v53 = vpop.eup %3103  ;;  %3123 = vtanh.f32 %v1996_v17  ;;  %v2157_v44 = vadd.f32 %v2156_v14, %v1835_v39 }
 0x3da   : >> { %v3106_v4 = vpop.eup %3105  ;;  %3125 = vtanh.f32 %v2155_v43 }
 0x3db   : >> { %v3108_v20 = vpop.eup %3107  ;;  %3127 = vtanh.f32 %v2157_v44  ;;  %v2629_v59 = vpack.c.bf16 %v3106_v4, %v3098_v5 }
 0x3dc   : >> { %v3110_v0 = vpop.eup %3109  ;;  %v2627_v57 = vpack.c.bf16 %v3108_v20, %v3100_v13  ;;  %v2226_v13 = vpop.permute.xlu1 %2225 }
 0x3dd   : >> { %v3112_v24 = vpop.eup %3111  ;;  %v2661_v33 = vpack.c.bf16 %v3110_v0, %v3102_v41 }
 0x3de   : >> { %v3114_v19 = vpop.eup %3113  ;;  %2628 = vmatprep.subr.bf16.mxu0 %v2627_v57  ;;  %v2659_v36 = vpack.c.bf16 %v3112_v24, %v3104_v53 }
 0x3df   : >> { %v3116_v49 = vpop.eup %3115  ;;  %2630 = vmatpush1.bf16.msra.mxu0 %v2629_v59 }
 0x3e0   : >> { %v3118_v27 = vpop.eup %3117  ;;  %2660 = vmatprep.subr.bf16.mxu1 %v2659_v36 }
 0x3e1   : >> { %v3120_v35 = vpop.eup %3119  ;;  %2662 = vmatpush1.bf16.msra.mxu1 %v2661_v33 }
 0x3e2   : >> { %v3122_v8 = vpop.eup %3121 }
 0x3e3   : >> { %v3124_v39 = vpop.eup %3123  ;;  %v2633_v18 = vpack.c.bf16 %v3122_v8, %v3114_v19 }
 0x3e4   : >> { %v3126_v60 = vpop.eup %3125  ;;  %v2631_v6 = vpack.c.bf16 %v3124_v39, %v3116_v49 }
 0x3e5   : >> { %v3128_v5 = vpop.eup %3127  ;;  %v2665_v55 = vpack.c.bf16 %v3126_v60, %v3118_v27 }
 0x3e6   : >> { %2632 = vmatprep.subr.bf16.mxu0 %v2631_v6  ;;  %v2663_v7 = vpack.c.bf16 %v3128_v5, %v3120_v35 }
 0x3e7   : >> { %2634 = vmatpush1.bf16.msra.mxu0 %v2633_v18 }
 0x3e8   : >> { %2664 = vmatprep.subr.bf16.mxu1 %v2663_v7 }
 0x3e9   : >> { %2666 = vmatpush1.bf16.msra.mxu1 %v2665_v55 }
 0x3ea   : >> { %2293 = vmatmul.mubr.f32.vlgmr.msra.gmra.mrb[64].mxu0 %v4948_v9 }
 0x3ec   : >> { %2364 = vmatmul.mubr.f32.vlgmr.msra.gmra.mrb[64].mxu1 %v4948_v9 }
 0x4bd   : >> { %v2294_v3 = vpop.f32.mrb[64].mxu0  ;;  %436 = sbr.rel (!%p434_p11) target bundleno = 72 (0x48), region = 100 }
 0x4be   : >> { %v2295_v17 = vadd.f32 %v2294_v3, %v2226_v13  ;;  %v2296_v41 = vpop.f32.mrb[65].mxu0 }
 0x4bf   : >> { %v2365_v43 = vpop.f32.mrb[64].mxu1  ;;  %v2297_v14 = vadd.f32 %v2296_v41, %v2226_v13 }
 0x4c0   : >> { %2372 = vst [vmem:[%s2371_s25] sm:$0xff] %v2295_v17  ;;  %v2366_v53 = vadd.f32 %v2365_v43, %v2226_v13  ;;  %v2367_v44 = vpop.f32.mrb[65].mxu1 }
 0x4c1   : >> { %2373 = vst [vmem:[%s2371_s25 + $0x8] sm:$0xff] %v2297_v14  ;;  %v2368_v4 = vadd.f32 %v2367_v44, %v2226_v13 }
 0x4c2   : >> { %2374 = vst [vmem:[%s2371_s25 + $0x10] sm:$0xff] %v2366_v53 }
 0x4c3   : >> { %2375 = vst [vmem:[%s2371_s25 + $0x18] sm:$0xff] %v2368_v4  ;;  %s3135_s25 = scalar_lea.vmem (%p434_p11), %s3134_s14, 4096 }
 0x4c4   : > { %p3137_p2 = scmp.lt.s32.totalorder %s3135_s25, %s3129_s22 }
 0x4c6   : > { %p3138_p3 = por %p3137_p2, %p3136_p1 }
 0x4c8   : > { %p3139_p4 = pnand %p3138_p3, %p3132_p0 }
 0x4ca   : > { %3142 = shalt.err (!%p3139_p4)
}
 0x4cb   : > { %s3143_s13 = scalar_lea.hbm %s4616_s24, 2048  ;;  %s3147_s26 = scalar_lea.hbm %s4665_s9, 4096 }
 0x4cc   : > { %p3144_p7 = scmp.ne.s32.totalorder %s4616_s24, %s3143_s13  ;;  %p3148_p10 = scmp.lt.u32.totalorder %s4616_s24, %s4665_s9 }
 0x4cd   : > { %p3149_p11 = scmp.lt.u32.totalorder %s3147_s26, %s3143_s13  ;;  %p3151_p13 = scmp.lt.u32.totalorder %s3143_s13, %s4616_s24 }
 0x4ce   : > { %p3145_p8 = pnand %p3144_p7, %p3294_p5 }
 0x4cf   : > { %p3150_p12 = por %p3149_p11, %p3148_p10 }
 0x4d0   : > { %p3146_p9 = pneg %p3145_p8 }
 0x4d1   : > { %p3152_p0 = por %p3151_p13, %p3150_p12 }
 0x4d3   : > { %p3153_p1 = pnand %p3152_p0, %p3146_p9 }
 0x4d5   : > { %3156 = shalt.err (!%p3153_p1)
}
 0x4d6   : > { %2667 = dma.vmem_to_hbm [thread:$0]  (%p3294_p5), %s2392_s16, 2048, %s4616_s24, %s2377_s17  }
 0x4d7 PF: > { %p2673_p2 = scmp.ge.s32.totalorder %s3195_s12, 2  ;;  %s2403_s18 = sand.u32 1, %s3183_s30  }
 0x4d8   : > { %s2404_s22 = scalar_lea.sflag [#allocation3], %s2403_s18 }
 0x4d9   : > { %p2670_p3 = pnand %p2673_p2, %p3298_p6 }
 0x4db   : > { %3178 = dma.done.wait (!%p2670_p3), %s2404_s22, 2048  }
 0x4dc   : > { %3180 = vsyncadd (!%p2670_p3), %s2404_s22, 4294965248  ;;  %s4950_s23 = sld [smem:[#allocation5_spill]]  ;;  %p19_p4 = scmp.ge.s32.totalorder %s3281_s15, 4  }
 0x4dd   : > { %s4951_s30 = smov %s3187_s10  ;;  %s4952_s10 = smov %s3191_s11 }
 0x4de   : > { %s4954_s12 = smov %s3281_s15  ;;  %21 = sbr.rel (!%p19_p4) target bundleno = 3 (0x3), region = 111 }
 0x4e2   : > { %s4953_s11 = smov %s4950_s23 }
 0x4e5   :  { %2409 = vsyncpa [#allocation3], 1 }
 0x4e6   :  { %2411 = vsyncpa [#allocation3 + $0x1], 1 }

</bundles_post_ra>
